<compile_context>
chip_gen: v5e
topology: v5e:2x2
jax: 0.10.0
libtpu: 0.0.40
codegen_flags: <defaults>
</compile_context>

<pallas_src>
import functools
import jax
import jax.numpy as jnp
from jax.experimental import pallas as pl
from jax.experimental.pallas import tpu as pltpu

# ---------------- small synthetic configuration ----------------
BATCH = 2
CANDIDATE = 4           # fbs == candidate (batch_size > 1 path of the reference)
NUM_S = 1
TEXT_LEN = 8
TEXT_VOCAB = 64
CSS = 4                 # model.css -> css**2 = 16 image tokens per image
N_TOK = CSS * CSS
IMG_VOCAB = 128         # image codebook size
EMB = 32                # token embedding dim
FEAT = 32               # CLIP feature dim
PATCH = 4               # decoded patch size per token
PP_CH = PATCH * PATCH * 3          # 48 values per token
TOK_FLAT = N_TOK * PP_CH           # 768 = 6 * 128  (lane-dense image slab width)
ROWS = CANDIDATE * N_TOK           # 64 (candidate-major rows: r = c*N_TOK + p)
H = W = CSS * PATCH     # 16 x 16 decoded images
CH = 3
LOGIT_SCALE = 100.0     # CLIP logit scale

CLIP_MEAN = (0.48145466, 0.4578275, 0.40821073)
CLIP_STD = (0.26862954, 0.26130258, 0.27577711)


# ------- fused kernel: sample + decode + (folded) preprocess + clip_score + top-k -------
def _fused_kernel(text_ids,                      # SMEM scalar-prefetch: (B, TEXT_LEN) int32
                  noise_ref, text_emb_ref, w_txt_ref, w_code_ref,
                  pos_tiled_ref, rep_ref, dec_wide_ref, tok_mask_ref, pool_ref,
                  w_img_ref, b_img_ref,
                  img_ref):
    b = pl.program_id(0)

    # ---- model.sample: text feature, computed ONCE per batch item (candidate-invariant) ----
    # token histogram from SMEM scalars, then mean-pool via ONE (1,Vt)@(Vt,E) matmul.
    vt_iota = jax.lax.broadcasted_iota(jnp.int32, (1, TEXT_VOCAB), 1)
    counts = jnp.zeros((1, TEXT_VOCAB), jnp.float32)
    for t in range(TEXT_LEN):                                          # static, 8 scalar reads
        counts = counts + (vt_iota == text_ids[b, t]).astype(jnp.float32)
    pooled = jnp.dot(counts * (1.0 / TEXT_LEN), text_emb_ref[...],
                     preferred_element_type=jnp.float32)               # (1, E)
    tf = jnp.dot(pooled, w_txt_ref[...],
                 preferred_element_type=jnp.float32)                   # (1, F) text feature

    # per-candidate sampling logits ("sampling noise" added after the shared feature)
    z = noise_ref[0] + tf                                              # (CAND, F)
    logits = jnp.dot(z, w_code_ref[...],
                     preferred_element_type=jnp.float32)               # (CAND, Vi)

    # ---- batched token sampler: ONE argmax over all (candidate, token) rows ----
    # TODO(synk): the real model does autoregressive top-k/top-p sampling; a deterministic
    # single-shot argmax "sampler" stands in (external model unknown).
    # rows r = c*N_TOK + p; logits replicated per token with an exact 0/1 matmul and
    # pos_bias pre-tiled on the host (no in-kernel relayout reshapes).
    lp = jnp.dot(rep_ref[...], logits,
                 preferred_element_type=jnp.float32) + pos_tiled_ref[...]   # (64, Vi)
    mx = jnp.max(lp, axis=-1, keepdims=True)
    vi_iota = jax.lax.broadcasted_iota(jnp.int32, (ROWS, IMG_VOCAB), 1)
    idx = jnp.min(jnp.where(lp >= mx, vi_iota, IMG_VOCAB),
                  axis=-1, keepdims=True)                              # first-occurrence argmax
    onehot = (vi_iota == idx).astype(jnp.bfloat16)                     # (64, Vi), exact in bf16

    # ---- decode ALL tokens with ONE bf16 MXU matmul (64,128)@(128,768) ----
    # dec_wide = (codebook @ w_dec) tiled across the 16 token column-blocks; masking with
    # tok_mask keeps only the block belonging to each row's token, so pooling with the 0/1
    # candidate matrix yields the exact lane-dense per-candidate patch slab (CAND, 768).
    rep = jnp.dot(onehot, dec_wide_ref[...],
                  preferred_element_type=jnp.float32)                  # (64, 768) replicated
    dilated = jnp.tanh(rep) * tok_mask_ref[...]                        # (64, 768) block-diagonal
    patches_wide = jnp.dot(pool_ref[...], dilated,
                           preferred_element_type=jnp.float32)         # (CAND, 768) f32 exact

    # ---- CLIP image encode (preprocess folded into w_img/b_img) — ONE bf16 matmul ----
    f = jnp.dot(patches_wide.astype(jnp.bfloat16), w_img_ref[...],
                preferred_element_type=jnp.float32) + b_img_ref[...]   # (CAND, F)

    # ---- ranker.clip_score: L2 normalize + cosine similarity vs the shared text feature ----
    fn = f * jax.lax.rsqrt(jnp.sum(f * f, axis=-1, keepdims=True) + 1e-12)
    tn = tf * jax.lax.rsqrt(jnp.sum(tf * tf, axis=-1, keepdims=True) + 1e-12)
    scores = LOGIT_SCALE * jnp.sum(fn * tn, axis=-1, keepdims=True)    # (CAND, 1)

    # ---- in-kernel top-num_s selection: write only the winners' patch slabs to HBM ----
    cand_iota = jax.lax.broadcasted_iota(jnp.int32, (CANDIDATE, 1), 0)
    remaining = scores
    rows = []
    for _ in range(NUM_S):
        smax = jnp.max(remaining, axis=0, keepdims=True)
        cidx = jnp.min(jnp.where(remaining >= smax, cand_iota, CANDIDATE),
                       axis=0, keepdims=True)                          # (1,1) winning candidate
        sel = (cand_iota == cidx).astype(jnp.float32)                  # (CAND,1) exact one-hot
        rows.append(jnp.sum(patches_wide * sel, axis=0, keepdims=True))  # (1, 768)
        remaining = jnp.where(sel > 0.5, -jnp.inf, remaining)
    img_ref[0] = rows[0] if NUM_S == 1 else jnp.concatenate(rows, axis=0)  # single lane-dense store


# ---------------- full forward (mirrors SamplerWithCLIP.forward, ar=False) ----------------
def sampler_with_clip_forward(text_idx, params, num_s=NUM_S, candidate=CANDIDATE, fbs=CANDIDATE):
    batch_size = text_idx.shape[0]
    fbs = min(candidate, fbs)
    if batch_size > 1:
        assert candidate == fbs, 'batch_size > 1, assert memory is enough'
    assert candidate % fbs == 0
    assert candidate == CANDIDATE and num_s == NUM_S

    noise3 = params["noise"].reshape(batch_size, candidate, FEAT)

    img_sel = pl.pallas_call(
        _fused_kernel,
        out_shape=jax.ShapeDtypeStruct((batch_size, num_s, TOK_FLAT), jnp.float32),
        grid_spec=pltpu.PrefetchScalarGridSpec(
            num_scalar_prefetch=1,                                      # text ids -> SMEM
            grid=(batch_size,),
            in_specs=[
                pl.BlockSpec((1, candidate, FEAT), lambda b, tids: (b, 0, 0)),      # noise
                pl.BlockSpec((TEXT_VOCAB, EMB), lambda b, tids: (0, 0)),            # text emb table
                pl.BlockSpec((EMB, FEAT), lambda b, tids: (0, 0)),                  # w_txt
                pl.BlockSpec((FEAT, IMG_VOCAB), lambda b, tids: (0, 0)),            # w_code
                pl.BlockSpec((ROWS, IMG_VOCAB), lambda b, tids: (0, 0)),            # pos_bias tiled
                pl.BlockSpec((ROWS, CANDIDATE), lambda b, tids: (0, 0)),            # 0/1 replicate mat
                pl.BlockSpec((IMG_VOCAB, TOK_FLAT), lambda b, tids: (0, 0)),        # dec_wide (bf16)
                pl.BlockSpec((ROWS, TOK_FLAT), lambda b, tids: (0, 0)),             # token mask
                pl.BlockSpec((CANDIDATE, ROWS), lambda b, tids: (0, 0)),            # 0/1 pool mat
                pl.BlockSpec((TOK_FLAT, FEAT), lambda b, tids: (0, 0)),             # folded w_img (bf16)
                pl.BlockSpec((1, FEAT), lambda b, tids: (0, 0)),                    # folded bias
            ],
            out_specs=pl.BlockSpec((1, num_s, TOK_FLAT), lambda b, tids: (b, 0, 0)),
        ),
        compiler_params=pltpu.CompilerParams(dimension_semantics=("parallel",)),
    )(text_idx.astype(jnp.int32), noise3,
      params["text_emb"], params["w_txt"], params["w_code"],
      params["pos_tiled"], params["rep_mat"], params["dec_wide"],
      params["tok_mask"], params["pool"], params["w_img_slab"], params["b_img"])

    # selected token/patch slab -> NHWC -> NCHW only for the B*num_s winners (tiny)
    sel = img_sel.reshape(batch_size * num_s, CSS, CSS, PATCH, PATCH, CH)
    sel = sel.transpose(0, 1, 3, 2, 4, 5).reshape(batch_size * num_s, H, W, CH)
    return sel.transpose(0, 3, 1, 2)                                    # NCHW, matches reference


# ---------------- deterministic synthetic parameters + host-side precompute ----------------
def init_params(key):
    ks = jax.random.split(key, 8)
    n = BATCH * CANDIDATE
    return {
        "text_emb": jax.random.normal(ks[0], (TEXT_VOCAB, EMB), jnp.float32) * 0.02,
        "w_txt":    jax.random.normal(ks[1], (EMB, FEAT), jnp.float32) * 0.1,
        "w_code":   jax.random.normal(ks[2], (FEAT, IMG_VOCAB), jnp.float32) * 0.1,
        "pos_bias": jax.random.normal(ks[3], (N_TOK, IMG_VOCAB), jnp.float32) * 0.1,
        "noise":    jax.random.normal(ks[4], (n, FEAT), jnp.float32),
        "codebook": jax.random.normal(ks[5], (IMG_VOCAB, EMB), jnp.float32) * 0.1,
        "w_dec":    jax.random.normal(ks[6], (EMB, PP_CH), jnp.float32) * 0.1,
        "w_img":    jax.random.normal(ks[7], (H * W * CH, FEAT), jnp.float32) * 0.02,
    }


def prepare_params(params):
    """Host-side precompute (runs once, outside the kernel):
       * dec_wide  = (codebook @ w_dec) tiled across the 16 token column blocks (bf16):
         one-hot @ dec_wide + token mask + 0/1 pool == codebook-lookup-then-decode, laid
         out directly as the lane-dense (CAND, 768) patch slab.
       * CLIP preprocess ((img*0.5+0.5 - mean)/std) folded into the image-encode matmul:
         w_img_slab = per-channel-scaled, token-major-permuted w_img (bf16); b_img = offset @ w_img.
       * pos_tiled / rep_mat / tok_mask / pool: exact 0/1 layout constants so the kernel
         never needs a vector relayout/reshape.
    """
    dec_tbl = jnp.dot(params["codebook"], params["w_dec"])                   # (Vi, PP_CH)
    dec_wide = jnp.tile(dec_tbl, (1, N_TOK)).astype(jnp.bfloat16)            # (Vi, 768)

    mean = jnp.asarray(CLIP_MEAN, jnp.float32)
    std = jnp.asarray(CLIP_STD, jnp.float32)
    s_rows = jnp.tile(0.5 / std, H * W)                                      # NHWC-flat, channel fastest
    t_rows = jnp.tile((0.5 - mean) / std, H * W)
    w_img = params["w_img"]                                                  # rows in NHWC-flat order
    b_img = jnp.dot(t_rows[None, :], w_img)                                  # (1, F), f32
    w_img_slab = ((w_img * s_rows[:, None])
                  .reshape(CSS, PATCH, CSS, PATCH, CH, FEAT)                 # (cy,py,cx,px,c,F)
                  .transpose(0, 2, 1, 3, 4, 5)                               # (cy,cx,py,px,c,F)
                  .reshape(TOK_FLAT, FEAT)).astype(jnp.bfloat16)             # token-major (768, F)

    pos_tiled = jnp.tile(params["pos_bias"], (CANDIDATE, 1))                 # (64, Vi): row r -> pos_bias[r%16]
    r = jnp.arange(ROWS)
    rep_mat = (r[:, None] // N_TOK ==
               jnp.arange(CANDIDATE)[None, :]).astype(jnp.float32)           # (64, CAND)
    pool = rep_mat.T                                                         # (CAND, 64)
    tok_mask = ((jnp.arange(TOK_FLAT)[None, :] // PP_CH) ==
                (r % N_TOK)[:, None]).astype(jnp.float32)                    # (64, 768)

    return {
        "text_emb": params["text_emb"], "w_txt": params["w_txt"],
        "w_code": params["w_code"], "noise": params["noise"],
        "pos_tiled": pos_tiled, "rep_mat": rep_mat, "dec_wide": dec_wide,
        "tok_mask": tok_mask, "pool": pool,
        "w_img_slab": w_img_slab, "b_img": b_img,
    }


if __name__ == "__main__":
    key = jax.random.PRNGKey(0)
    kp, kt = jax.random.split(key)
    params = prepare_params(init_params(kp))
    # TODO(synk): reference runs T.ToPILImage() + CLIP preprocess (PIL resize/crop); images
    # already match the CLIP resolution here, so only the tensor normalization is modeled.
    text_idx = jax.random.randint(kt, (BATCH, TEXT_LEN), 0, TEXT_VOCAB, dtype=jnp.int32)

    fwd = jax.jit(functools.partial(sampler_with_clip_forward, params=params))
    image_sample = fwd(text_idx)
    jax.block_until_ready(image_sample)

    assert image_sample.shape == (BATCH * NUM_S, CH, H, W), image_sample.shape
    assert image_sample.dtype == jnp.float32
    print("KERNEL_OK")
</pallas_src>

<mosaic_0001>
module attributes {stable_mosaic.version = 11 : i64} {
  func.func @_fused_kernel(%arg0: i32, %arg1: memref<2x8xi32, #tpu.memory_space<smem>>, %arg2: memref<1x4x32xf32, #tpu.memory_space<vmem>>, %arg3: memref<64x32xf32, #tpu.memory_space<vmem>>, %arg4: memref<32x32xf32, #tpu.memory_space<vmem>>, %arg5: memref<32x128xf32, #tpu.memory_space<vmem>>, %arg6: memref<64x128xf32, #tpu.memory_space<vmem>>, %arg7: memref<64x4xf32, #tpu.memory_space<vmem>>, %arg8: memref<128x768xbf16, #tpu.memory_space<vmem>>, %arg9: memref<64x768xf32, #tpu.memory_space<vmem>>, %arg10: memref<4x64xf32, #tpu.memory_space<vmem>>, %arg11: memref<768x32xbf16, #tpu.memory_space<vmem>>, %arg12: memref<1x32xf32, #tpu.memory_space<vmem>>, %arg13: memref<1x1x768xf32, #tpu.memory_space<vmem>>) attributes {dimension_semantics = [#tpu.dimension_semantics<parallel>], iteration_bounds = array<i64: 2>, scalar_prefetch = 1 : i64, scratch_operands = 0 : i64, tpu.core_type = #tpu.core_type<tc>, window_params = [{transform_indices = @transform_0, window_bounds = array<i64: 1, 4, 32>}, {pipeline_mode = #tpu.pipeline_mode<synchronous>, transform_indices = @transform_1, window_bounds = array<i64: 64, 32>}, {pipeline_mode = #tpu.pipeline_mode<synchronous>, transform_indices = @transform_2, window_bounds = array<i64: 32, 32>}, {pipeline_mode = #tpu.pipeline_mode<synchronous>, transform_indices = @transform_3, window_bounds = array<i64: 32, 128>}, {pipeline_mode = #tpu.pipeline_mode<synchronous>, transform_indices = @transform_4, window_bounds = array<i64: 64, 128>}, {pipeline_mode = #tpu.pipeline_mode<synchronous>, transform_indices = @transform_5, window_bounds = array<i64: 64, 4>}, {pipeline_mode = #tpu.pipeline_mode<synchronous>, transform_indices = @transform_6, window_bounds = array<i64: 128, 768>}, {pipeline_mode = #tpu.pipeline_mode<synchronous>, transform_indices = @transform_7, window_bounds = array<i64: 64, 768>}, {pipeline_mode = #tpu.pipeline_mode<synchronous>, transform_indices = @transform_8, window_bounds = array<i64: 4, 64>}, {pipeline_mode = #tpu.pipeline_mode<synchronous>, transform_indices = @transform_9, window_bounds = array<i64: 768, 32>}, {pipeline_mode = #tpu.pipeline_mode<synchronous>, transform_indices = @transform_10, window_bounds = array<i64: 1, 32>}, {transform_indices = @transform_11, window_bounds = array<i64: 1, 1, 768>}]} {
    %0 = tpu.iota {dimensions = array<i32: 1>} : vector<1x64xi32>
    %cst = arith.constant 0.000000e+00 : f32
    %1 = vector.broadcast %cst : f32 to vector<1x64xf32>
    %2 = arith.index_cast %arg0 : i32 to index
    %c0 = arith.constant 0 : index
    %3 = memref.load %arg1[%2, %c0] : memref<2x8xi32, #tpu.memory_space<smem>>
    %4 = vector.broadcast %3 : i32 to vector<1x64xi32>
    %5 = arith.cmpi eq, %0, %4 : vector<1x64xi32>
    %6 = arith.extui %5 : vector<1x64xi1> to vector<1x64xi32>
    %7 = arith.sitofp %6 : vector<1x64xi32> to vector<1x64xf32>
    %8 = arith.addf %1, %7 : vector<1x64xf32>
    %9 = arith.index_cast %arg0 : i32 to index
    %c1 = arith.constant 1 : index
    %10 = memref.load %arg1[%9, %c1] : memref<2x8xi32, #tpu.memory_space<smem>>
    %11 = vector.broadcast %10 : i32 to vector<1x64xi32>
    %12 = arith.cmpi eq, %0, %11 : vector<1x64xi32>
    %13 = arith.extui %12 : vector<1x64xi1> to vector<1x64xi32>
    %14 = arith.sitofp %13 : vector<1x64xi32> to vector<1x64xf32>
    %15 = arith.addf %8, %14 : vector<1x64xf32>
    %16 = arith.index_cast %arg0 : i32 to index
    %c2 = arith.constant 2 : index
    %17 = memref.load %arg1[%16, %c2] : memref<2x8xi32, #tpu.memory_space<smem>>
    %18 = vector.broadcast %17 : i32 to vector<1x64xi32>
    %19 = arith.cmpi eq, %0, %18 : vector<1x64xi32>
    %20 = arith.extui %19 : vector<1x64xi1> to vector<1x64xi32>
    %21 = arith.sitofp %20 : vector<1x64xi32> to vector<1x64xf32>
    %22 = arith.addf %15, %21 : vector<1x64xf32>
    %23 = arith.index_cast %arg0 : i32 to index
    %c3 = arith.constant 3 : index
    %24 = memref.load %arg1[%23, %c3] : memref<2x8xi32, #tpu.memory_space<smem>>
    %25 = vector.broadcast %24 : i32 to vector<1x64xi32>
    %26 = arith.cmpi eq, %0, %25 : vector<1x64xi32>
    %27 = arith.extui %26 : vector<1x64xi1> to vector<1x64xi32>
    %28 = arith.sitofp %27 : vector<1x64xi32> to vector<1x64xf32>
    %29 = arith.addf %22, %28 : vector<1x64xf32>
    %30 = arith.index_cast %arg0 : i32 to index
    %c4 = arith.constant 4 : index
    %31 = memref.load %arg1[%30, %c4] : memref<2x8xi32, #tpu.memory_space<smem>>
    %32 = vector.broadcast %31 : i32 to vector<1x64xi32>
    %33 = arith.cmpi eq, %0, %32 : vector<1x64xi32>
    %34 = arith.extui %33 : vector<1x64xi1> to vector<1x64xi32>
    %35 = arith.sitofp %34 : vector<1x64xi32> to vector<1x64xf32>
    %36 = arith.addf %29, %35 : vector<1x64xf32>
    %37 = arith.index_cast %arg0 : i32 to index
    %c5 = arith.constant 5 : index
    %38 = memref.load %arg1[%37, %c5] : memref<2x8xi32, #tpu.memory_space<smem>>
    %39 = vector.broadcast %38 : i32 to vector<1x64xi32>
    %40 = arith.cmpi eq, %0, %39 : vector<1x64xi32>
    %41 = arith.extui %40 : vector<1x64xi1> to vector<1x64xi32>
    %42 = arith.sitofp %41 : vector<1x64xi32> to vector<1x64xf32>
    %43 = arith.addf %36, %42 : vector<1x64xf32>
    %44 = arith.index_cast %arg0 : i32 to index
    %c6 = arith.constant 6 : index
    %45 = memref.load %arg1[%44, %c6] : memref<2x8xi32, #tpu.memory_space<smem>>
    %46 = vector.broadcast %45 : i32 to vector<1x64xi32>
    %47 = arith.cmpi eq, %0, %46 : vector<1x64xi32>
    %48 = arith.extui %47 : vector<1x64xi1> to vector<1x64xi32>
    %49 = arith.sitofp %48 : vector<1x64xi32> to vector<1x64xf32>
    %50 = arith.addf %43, %49 : vector<1x64xf32>
    %51 = arith.index_cast %arg0 : i32 to index
    %c7 = arith.constant 7 : index
    %52 = memref.load %arg1[%51, %c7] : memref<2x8xi32, #tpu.memory_space<smem>>
    %53 = vector.broadcast %52 : i32 to vector<1x64xi32>
    %54 = arith.cmpi eq, %0, %53 : vector<1x64xi32>
    %55 = arith.extui %54 : vector<1x64xi1> to vector<1x64xi32>
    %56 = arith.sitofp %55 : vector<1x64xi32> to vector<1x64xf32>
    %57 = arith.addf %50, %56 : vector<1x64xf32>
    %cst_0 = arith.constant 1.250000e-01 : f32
    %58 = vector.broadcast %cst_0 : f32 to vector<1x64xf32>
    %59 = arith.mulf %57, %58 : vector<1x64xf32>
    %c0_1 = arith.constant 0 : index
    %c0_2 = arith.constant 0 : index
    %60 = vector.load %arg3[%c0_1, %c0_2] : memref<64x32xf32, #tpu.memory_space<vmem>>, vector<64x32xf32>
    %cst_3 = arith.constant dense<0.000000e+00> : vector<1x32xf32>
    %61 = tpu.matmul %59, %60, %cst_3 {dimension_numbers = #tpu.dot_dimension_numbers<[1], [0], [0], [1], [0, 0, 1, 1], [], []>} : vector<1x64xf32>, vector<64x32xf32>, vector<1x32xf32> -> vector<1x32xf32>
    %c0_4 = arith.constant 0 : index
    %c0_5 = arith.constant 0 : index
    %62 = vector.load %arg4[%c0_4, %c0_5] : memref<32x32xf32, #tpu.memory_space<vmem>>, vector<32x32xf32>
    %cst_6 = arith.constant dense<0.000000e+00> : vector<1x32xf32>
    %63 = tpu.matmul %61, %62, %cst_6 {dimension_numbers = #tpu.dot_dimension_numbers<[1], [0], [0], [1], [0, 0, 1, 1], [], []>} : vector<1x32xf32>, vector<32x32xf32>, vector<1x32xf32> -> vector<1x32xf32>
    %c0_7 = arith.constant 0 : index
    %c0_8 = arith.constant 0 : index
    %c0_9 = arith.constant 0 : index
    %64 = vector.load %arg2[%c0_7, %c0_8, %c0_9] : memref<1x4x32xf32, #tpu.memory_space<vmem>>, vector<1x4x32xf32>
    %65 = vector.shape_cast %64 : vector<1x4x32xf32> to vector<4x32xf32>
    %66 = vector.broadcast %63 : vector<1x32xf32> to vector<4x32xf32>
    %67 = arith.addf %65, %66 : vector<4x32xf32>
    %c0_10 = arith.constant 0 : index
    %c0_11 = arith.constant 0 : index
    %68 = vector.load %arg5[%c0_10, %c0_11] : memref<32x128xf32, #tpu.memory_space<vmem>>, vector<32x128xf32>
    %cst_12 = arith.constant dense<0.000000e+00> : vector<4x128xf32>
    %69 = tpu.matmul %67, %68, %cst_12 {dimension_numbers = #tpu.dot_dimension_numbers<[1], [0], [0], [1], [0, 0, 1, 1], [], []>} : vector<4x32xf32>, vector<32x128xf32>, vector<4x128xf32> -> vector<4x128xf32>
    %c0_13 = arith.constant 0 : index
    %c0_14 = arith.constant 0 : index
    %70 = vector.load %arg7[%c0_13, %c0_14] : memref<64x4xf32, #tpu.memory_space<vmem>>, vector<64x4xf32>
    %cst_15 = arith.constant dense<0.000000e+00> : vector<64x128xf32>
    %71 = tpu.matmul %70, %69, %cst_15 {dimension_numbers = #tpu.dot_dimension_numbers<[1], [0], [0], [1], [0, 0, 1, 1], [], []>} : vector<64x4xf32>, vector<4x128xf32>, vector<64x128xf32> -> vector<64x128xf32>
    %c0_16 = arith.constant 0 : index
    %c0_17 = arith.constant 0 : index
    %72 = vector.load %arg6[%c0_16, %c0_17] : memref<64x128xf32, #tpu.memory_space<vmem>>, vector<64x128xf32>
    %73 = arith.addf %71, %72 : vector<64x128xf32>
    %cst_18 = arith.constant dense<0xFF800000> : vector<64xf32>
    %74 = vector.multi_reduction <maximumf>, %73, %cst_18 [1] : vector<64x128xf32> to vector<64xf32>
    %75 = vector.shape_cast %74 : vector<64xf32> to vector<64x1xf32>
    %76 = tpu.iota {dimensions = array<i32: 1>} : vector<64x128xi32>
    %77 = vector.broadcast %75 : vector<64x1xf32> to vector<64x128xf32>
    %78 = arith.cmpf oge, %73, %77 : vector<64x128xf32>
    %c128_i32 = arith.constant 128 : i32
    %79 = vector.broadcast %c128_i32 : i32 to vector<64x128xi32>
    %80 = arith.select %78, %76, %79 : vector<64x128xi1>, vector<64x128xi32>
    %cst_19 = arith.constant dense<2147483647> : vector<64xi32>
    %81 = vector.multi_reduction <minsi>, %80, %cst_19 [1] : vector<64x128xi32> to vector<64xi32>
    %82 = vector.shape_cast %81 : vector<64xi32> to vector<64x1xi32>
    %83 = vector.broadcast %82 : vector<64x1xi32> to vector<64x128xi32>
    %84 = arith.cmpi eq, %76, %83 : vector<64x128xi32>
    %85 = arith.extui %84 : vector<64x128xi1> to vector<64x128xi32>
    %86 = arith.sitofp %85 : vector<64x128xi32> to vector<64x128xf32>
    %87 = arith.truncf %86 : vector<64x128xf32> to vector<64x128xbf16>
    %c0_20 = arith.constant 0 : index
    %c0_21 = arith.constant 0 : index
    %88 = vector.load %arg8[%c0_20, %c0_21] : memref<128x768xbf16, #tpu.memory_space<vmem>>, vector<128x768xbf16>
    %cst_22 = arith.constant dense<0.000000e+00> : vector<64x768xf32>
    %89 = tpu.matmul %87, %88, %cst_22 {dimension_numbers = #tpu.dot_dimension_numbers<[1], [0], [0], [1], [0, 0, 1, 1], [], []>} : vector<64x128xbf16>, vector<128x768xbf16>, vector<64x768xf32> -> vector<64x768xf32>
    %90 = math.tanh %89 : vector<64x768xf32>
    %c0_23 = arith.constant 0 : index
    %c0_24 = arith.constant 0 : index
    %91 = vector.load %arg9[%c0_23, %c0_24] : memref<64x768xf32, #tpu.memory_space<vmem>>, vector<64x768xf32>
    %92 = arith.mulf %90, %91 : vector<64x768xf32>
    %c0_25 = arith.constant 0 : index
    %c0_26 = arith.constant 0 : index
    %93 = vector.load %arg10[%c0_25, %c0_26] : memref<4x64xf32, #tpu.memory_space<vmem>>, vector<4x64xf32>
    %cst_27 = arith.constant dense<0.000000e+00> : vector<4x768xf32>
    %94 = tpu.matmul %93, %92, %cst_27 {dimension_numbers = #tpu.dot_dimension_numbers<[1], [0], [0], [1], [0, 0, 1, 1], [], []>} : vector<4x64xf32>, vector<64x768xf32>, vector<4x768xf32> -> vector<4x768xf32>
    %95 = arith.truncf %94 : vector<4x768xf32> to vector<4x768xbf16>
    %c0_28 = arith.constant 0 : index
    %c0_29 = arith.constant 0 : index
    %96 = vector.load %arg11[%c0_28, %c0_29] : memref<768x32xbf16, #tpu.memory_space<vmem>>, vector<768x32xbf16>
    %cst_30 = arith.constant dense<0.000000e+00> : vector<4x32xf32>
    %97 = tpu.matmul %95, %96, %cst_30 {dimension_numbers = #tpu.dot_dimension_numbers<[1], [0], [0], [1], [0, 0, 1, 1], [], []>} : vector<4x768xbf16>, vector<768x32xbf16>, vector<4x32xf32> -> vector<4x32xf32>
    %c0_31 = arith.constant 0 : index
    %c0_32 = arith.constant 0 : index
    %98 = vector.load %arg12[%c0_31, %c0_32] : memref<1x32xf32, #tpu.memory_space<vmem>>, vector<1x32xf32>
    %99 = vector.broadcast %98 : vector<1x32xf32> to vector<4x32xf32>
    %100 = arith.addf %97, %99 : vector<4x32xf32>
    %101 = arith.mulf %100, %100 : vector<4x32xf32>
    %cst_33 = arith.constant dense<0.000000e+00> : vector<4xf32>
    %102 = vector.multi_reduction <add>, %101, %cst_33 [1] : vector<4x32xf32> to vector<4xf32>
    %103 = vector.shape_cast %102 : vector<4xf32> to vector<4x1xf32>
    %cst_34 = arith.constant 9.99999996E-13 : f32
    %104 = vector.broadcast %cst_34 : f32 to vector<4x1xf32>
    %105 = arith.addf %103, %104 : vector<4x1xf32>
    %106 = math.rsqrt %105 : vector<4x1xf32>
    %107 = vector.broadcast %106 : vector<4x1xf32> to vector<4x32xf32>
    %108 = arith.mulf %100, %107 : vector<4x32xf32>
    %109 = arith.mulf %63, %63 : vector<1x32xf32>
    %cst_35 = arith.constant dense<0.000000e+00> : vector<1xf32>
    %110 = vector.multi_reduction <add>, %109, %cst_35 [1] : vector<1x32xf32> to vector<1xf32>
    %111 = vector.shape_cast %110 : vector<1xf32> to vector<1x1xf32>
    %cst_36 = arith.constant 9.99999996E-13 : f32
    %112 = vector.broadcast %cst_36 : f32 to vector<1x1xf32>
    %113 = arith.addf %111, %112 : vector<1x1xf32>
    %114 = math.rsqrt %113 : vector<1x1xf32>
    %115 = vector.broadcast %114 : vector<1x1xf32> to vector<1x32xf32>
    %116 = arith.mulf %63, %115 : vector<1x32xf32>
    %117 = vector.broadcast %116 : vector<1x32xf32> to vector<4x32xf32>
    %118 = arith.mulf %108, %117 : vector<4x32xf32>
    %cst_37 = arith.constant dense<0.000000e+00> : vector<4xf32>
    %119 = vector.multi_reduction <add>, %118, %cst_37 [1] : vector<4x32xf32> to vector<4xf32>
    %120 = vector.shape_cast %119 : vector<4xf32> to vector<4x1xf32>
    %cst_38 = arith.constant 1.000000e+02 : f32
    %121 = vector.broadcast %cst_38 : f32 to vector<4x1xf32>
    %122 = arith.mulf %121, %120 : vector<4x1xf32>
    %123 = tpu.iota {dimensions = array<i32: 0>} : vector<4x1xi32>
    %cst_39 = arith.constant dense<0xFF800000> : vector<1xf32>
    %124 = vector.multi_reduction <maximumf>, %122, %cst_39 [0] : vector<4x1xf32> to vector<1xf32>
    %125 = vector.shape_cast %124 : vector<1xf32> to vector<1x1xf32>
    %126 = vector.broadcast %125 : vector<1x1xf32> to vector<4x1xf32>
    %127 = arith.cmpf oge, %122, %126 : vector<4x1xf32>
    %c4_i32 = arith.constant 4 : i32
    %128 = vector.broadcast %c4_i32 : i32 to vector<4x1xi32>
    %129 = arith.select %127, %123, %128 : vector<4x1xi1>, vector<4x1xi32>
    %cst_40 = arith.constant dense<2147483647> : vector<1xi32>
    %130 = vector.multi_reduction <minsi>, %129, %cst_40 [0] : vector<4x1xi32> to vector<1xi32>
    %131 = vector.shape_cast %130 : vector<1xi32> to vector<1x1xi32>
    %132 = vector.broadcast %131 : vector<1x1xi32> to vector<4x1xi32>
    %133 = arith.cmpi eq, %123, %132 : vector<4x1xi32>
    %134 = arith.extui %133 : vector<4x1xi1> to vector<4x1xi32>
    %135 = arith.sitofp %134 : vector<4x1xi32> to vector<4x1xf32>
    %136 = vector.broadcast %135 : vector<4x1xf32> to vector<4x768xf32>
    %137 = arith.mulf %94, %136 : vector<4x768xf32>
    %cst_41 = arith.constant dense<0.000000e+00> : vector<768xf32>
    %138 = vector.multi_reduction <add>, %137, %cst_41 [0] : vector<4x768xf32> to vector<768xf32>
    %139 = vector.shape_cast %138 : vector<768xf32> to vector<1x768xf32>
    %c0_42 = arith.constant 0 : index
    %c0_43 = arith.constant 0 : index
    %c0_44 = arith.constant 0 : index
    %140 = vector.load %arg13[%c0_42, %c0_43, %c0_44] : memref<1x1x768xf32, #tpu.memory_space<vmem>>, vector<1x1x768xf32>
    %141 = vector.shape_cast %140 : vector<1x1x768xf32> to vector<1x768xf32>
    %142 = vector.shape_cast %139 : vector<1x768xf32> to vector<1x1x768xf32>
    tpu.vector_store %arg13[%c0_42, %c0_43, %c0_44], %142 {strides = array<i32>} : memref<1x1x768xf32, #tpu.memory_space<vmem>>, vector<1x1x768xf32>,
    return
  }
  func.func @transform_0(%arg0: i32, %arg1: memref<2x8xi32, #tpu.memory_space<smem>>) -> (i32, i32, i32) {
    %c0_i32 = arith.constant 0 : i32
    %c0_i32_0 = arith.constant 0 : i32
    %c0_i32_1 = arith.constant 0 : i32
    return %arg0, %c0_i32, %c0_i32_0 : i32, i32, i32
  }
  func.func @transform_1(%arg0: i32, %arg1: memref<2x8xi32, #tpu.memory_space<smem>>) -> (i32, i32) {
    %c0_i32 = arith.constant 0 : i32
    %c0_i32_0 = arith.constant 0 : i32
    %c0_i32_1 = arith.constant 0 : i32
    return %c0_i32, %c0_i32_0 : i32, i32
  }
  func.func @transform_2(%arg0: i32, %arg1: memref<2x8xi32, #tpu.memory_space<smem>>) -> (i32, i32) {
    %c0_i32 = arith.constant 0 : i32
    %c0_i32_0 = arith.constant 0 : i32
    %c0_i32_1 = arith.constant 0 : i32
    return %c0_i32, %c0_i32_0 : i32, i32
  }
  func.func @transform_3(%arg0: i32, %arg1: memref<2x8xi32, #tpu.memory_space<smem>>) -> (i32, i32) {
    %c0_i32 = arith.constant 0 : i32
    %c0_i32_0 = arith.constant 0 : i32
    %c0_i32_1 = arith.constant 0 : i32
    return %c0_i32, %c0_i32_0 : i32, i32
  }
  func.func @transform_4(%arg0: i32, %arg1: memref<2x8xi32, #tpu.memory_space<smem>>) -> (i32, i32) {
    %c0_i32 = arith.constant 0 : i32
    %c0_i32_0 = arith.constant 0 : i32
    %c0_i32_1 = arith.constant 0 : i32
    return %c0_i32, %c0_i32_0 : i32, i32
  }
  func.func @transform_5(%arg0: i32, %arg1: memref<2x8xi32, #tpu.memory_space<smem>>) -> (i32, i32) {
    %c0_i32 = arith.constant 0 : i32
    %c0_i32_0 = arith.constant 0 : i32
    %c0_i32_1 = arith.constant 0 : i32
    return %c0_i32, %c0_i32_0 : i32, i32
  }
  func.func @transform_6(%arg0: i32, %arg1: memref<2x8xi32, #tpu.memory_space<smem>>) -> (i32, i32) {
    %c0_i32 = arith.constant 0 : i32
    %c0_i32_0 = arith.constant 0 : i32
    %c0_i32_1 = arith.constant 0 : i32
    return %c0_i32, %c0_i32_0 : i32, i32
  }
  func.func @transform_7(%arg0: i32, %arg1: memref<2x8xi32, #tpu.memory_space<smem>>) -> (i32, i32) {
    %c0_i32 = arith.constant 0 : i32
    %c0_i32_0 = arith.constant 0 : i32
    %c0_i32_1 = arith.constant 0 : i32
    return %c0_i32, %c0_i32_0 : i32, i32
  }
  func.func @transform_8(%arg0: i32, %arg1: memref<2x8xi32, #tpu.memory_space<smem>>) -> (i32, i32) {
    %c0_i32 = arith.constant 0 : i32
    %c0_i32_0 = arith.constant 0 : i32
    %c0_i32_1 = arith.constant 0 : i32
    return %c0_i32, %c0_i32_0 : i32, i32
  }
  func.func @transform_9(%arg0: i32, %arg1: memref<2x8xi32, #tpu.memory_space<smem>>) -> (i32, i32) {
    %c0_i32 = arith.constant 0 : i32
    %c0_i32_0 = arith.constant 0 : i32
    %c0_i32_1 = arith.constant 0 : i32
    return %c0_i32, %c0_i32_0 : i32, i32
  }
  func.func @transform_10(%arg0: i32, %arg1: memref<2x8xi32, #tpu.memory_space<smem>>) -> (i32, i32) {
    %c0_i32 = arith.constant 0 : i32
    %c0_i32_0 = arith.constant 0 : i32
    %c0_i32_1 = arith.constant 0 : i32
    return %c0_i32, %c0_i32_0 : i32, i32
  }
  func.func @transform_11(%arg0: i32, %arg1: memref<2x8xi32, #tpu.memory_space<smem>>) -> (i32, i32, i32) {
    %c0_i32 = arith.constant 0 : i32
    %c0_i32_0 = arith.constant 0 : i32
    %c0_i32_1 = arith.constant 0 : i32
    return %arg0, %c0_i32, %c0_i32_0 : i32, i32, i32
  }
}

</mosaic_0001>

<bundles_post_ra>
// kernel: sampler_with_clip_forward.1
= control target key start
LH: loop header
LB: loop body
LE: loop exit
PB: predicated region body
PF: predicated region fallthrough
CT: control target
= control target key end

     0   :  { %s3541_s24 = smov [#allocation3]   ;;  %s4085_s0 = inlined_call_operand.hbm [shape: s32[2,8], index: 0, kind: input, shape index: {}]   ;;  %s4086_s1 = inlined_call_operand.vmem [shape: f32[2,4,32], index: 1, kind: input, shape index: {}]   ;;  %s4087_s2 = inlined_call_operand.hbm [shape: f32[64,32], index: 2, kind: input, shape index: {}]   ;;  %s4088_s3 = inlined_call_operand.hbm [shape: f32[32,32], index: 3, kind: input, shape index: {}]   ;;  %s4089_s4 = inlined_call_operand.hbm [shape: f32[32,128], index: 4, kind: input, shape index: {}]   ;;  %s4090_s5 = inlined_call_operand.hbm [shape: f32[64,128], index: 5, kind: input, shape index: {}]   ;;  %s4091_s6 = inlined_call_operand.hbm [shape: f32[64,4], index: 6, kind: input, shape index: {}]   ;;  %s4092_s7 = inlined_call_operand.hbm [shape: bf16[128,768], index: 7, kind: input, shape index: {}]   ;;  %s4093_s8 = inlined_call_operand.hbm [shape: f32[64,768], index: 8, kind: input, shape index: {}]   ;;  %s4094_s9 = inlined_call_operand.hbm [shape: f32[4,64], index: 9, kind: input, shape index: {}]   ;;  %s4095_s10 = inlined_call_operand.hbm [shape: bf16[768,32], index: 10, kind: input, shape index: {}]   ;;  %s4096_s11 = inlined_call_operand.vmem [shape: f32[1,32], index: 11, kind: input, shape index: {}]   ;;  %s4097_s12 = inlined_call_operand.vmem [shape: f32[2,1,768], index: 12, kind: output, shape index: {}]  }
   0x1   :  { %4102 = sst [smem:[#allocation24_spill]] %s4087_s2  ;;  %s18_s23 = sshll.u32 %s4085_s0, 4  ;;  %s19_s23 = int_to_ptr.hbm [resolvable:$true] %s18_s23 }
   0x2   :  { %21 = dma.hbm_to_smem %s19_s23, 32, %s3541_s24, [#allocation2] }
   0x3   :  { %3515 = dma.done.wait [#allocation2], 32 }
   0x4   :  { %3516 = vsyncadd [#allocation2], 4294967264 }
   0x5   :  { %24 = sfence }
   0x6   :  { %25 = vsyncpa [#allocation5], 0 }
   0x7   :  { %26 = vsyncpa [#allocation7], 0 }
   0x8   :  { %27 = vsyncpa [#allocation10], 0 }
   0x9   :  { %28 = vsyncpa [#allocation13], 0 }
   0xa   :  { %29 = vsyncpa [#allocation16], 0  ;;  %s3629_s25 = smov 0  }
   0xb LB: > { %s3635_s0 = sadd.s32 4294967295, %s3539_s25   ;;  %p2429_p0 = scmp.ge.s32.totalorder %s3539_s25, 1  ;;  %s3539_s25 = sphi %s3629_s25, %s35_s25  }
   0xc   : > { %p302_p1 = scmp.lt.s32.totalorder %s3539_s25, 3  ;;  %p3082_p2 = scmp.eq.s32.totalorder %s3635_s0, 0 }
   0xd   : > { %s327_s28 = sshll.u32 %s4088_s3, 4  ;;  %s355_s14 = sshll.u32 %s4090_s5, 4  ;;  %s328_s28 = int_to_ptr.hbm [resolvable:$true] %s327_s28  ;;  %s356_s14 = int_to_ptr.hbm [resolvable:$true] %s355_s14 }
   0xe   : > { %p3643_p3 = pnand %p2429_p0, %p302_p1  ;;  %s3542_s15 = smov [#allocation6]  }
   0xf   : > { %s329_s16 = sshll.u32 %s3542_s15, 4  ;;  %s3543_s18 = smov [#allocation9]   ;;  %s330_s16 = int_to_ptr.vmem [resolvable:$true] %s329_s16 }
  0x10   : > { %p3054_p4 = pneg %p3643_p3  ;;  %s357_s19 = sshll.u32 %s3543_s18, 4  ;;  %s358_s19 = int_to_ptr.vmem [resolvable:$true] %s357_s19 }
  0x11   : > { %s383_s22 = sshll.u32 %s4092_s7, 4  ;;  %s4098_s23 = smov 128   ;;  %s384_s22 = int_to_ptr.hbm [resolvable:$true] %s383_s22 }
  0x12   : > { %p3654_p5 = pnand %p3082_p2, %p3054_p4  ;;  %s4100_s24 = smov 8  }
  0x13   : > { %s3546_s26 = smov [#allocation12]   ;;  %s3547_s30 = smov 384  }
  0x14   : > { %3060 = dma.hbm_to_vmem [thread:$0]  (!%p3654_p5), %s328_s28, 512, %s330_s16, [#allocation7], %s4098_s23, %s4098_s23, %s4100_s24  }
  0x15   : > { %3066 = dma.hbm_to_vmem [thread:$0]  (!%p3654_p5), %s356_s14, 1024, %s358_s19, [#allocation10], %s4098_s23, %s4098_s23, %s4100_s24  }
  0x16   : > { %s385_s27 = sshll.u32 %s3546_s26, 4  ;;  %s3548_s13 = smov 24   ;;  %s386_s27 = int_to_ptr.vmem [resolvable:$true] %s385_s27 }
  0x17   : > { %3072 = dma.hbm_to_vmem [thread:$0]  (!%p3654_p5), %s384_s22, 6144, %s386_s27, [#allocation13], %s3547_s30, %s3547_s30, %s3548_s13  }
  0x18   : > { %s412_s20 = sshll.u32 %s4094_s9, 4  ;;  %s3549_s28 = smov [#allocation15]   ;;  %s413_s20 = int_to_ptr.hbm [resolvable:$true] %s412_s20 }
  0x19   : > { %s414_s16 = sshll.u32 %s3549_s28, 4  ;;  %s4105_s2 = sld [smem:[#allocation24_spill]]  ;;  %s415_s16 = int_to_ptr.vmem [resolvable:$true] %s414_s16 }
  0x1a   : > { %3078 = dma.hbm_to_vmem [thread:$0]  (!%p3654_p5), %s413_s20, 64, %s415_s16, [#allocation16]  }
  0x1b   : > { %s3550_s26 = smov [#allocation4]   ;;  %s341_s27 = sshll.u32 %s4089_s4, 4  ;;  %s342_s27 = int_to_ptr.hbm [resolvable:$true] %s341_s27 }
  0x1c   : > { %s315_s23 = sshll.u32 %s3550_s26, 4  ;;  %s4106_s30 = smov 8   ;;  %s316_s23 = int_to_ptr.vmem [resolvable:$true] %s315_s23 }
  0x1d   : > { %s4107_s13 = smov 128   ;;  %s369_s28 = sshll.u32 %s4091_s6, 4  ;;  %s370_s28 = int_to_ptr.hbm [resolvable:$true] %s369_s28 }
  0x1e   : > { %s3551_s20 = smov [#allocation8]   ;;  %s3552_s24 = smov [#allocation11]  }
  0x1f   : > { %s313_s19 = sshll.u32 %s4105_s2, 4  ;;  %s343_s16 = sshll.u32 %s3551_s20, 4  ;;  %s314_s19 = int_to_ptr.hbm [resolvable:$true] %s313_s19  ;;  %s344_s16 = int_to_ptr.vmem [resolvable:$true] %s343_s16 }
  0x20   : > { %3057 = dma.hbm_to_vmem [thread:$0]  (!%p3654_p5), %s314_s19, 1024, %s316_s23, [#allocation5], %s4107_s13, %s4107_s13, %s4106_s30  }
  0x21   : > { %3063 = dma.hbm_to_vmem [thread:$0]  (!%p3654_p5), %s342_s27, 512, %s344_s16, [#allocation7], %s4107_s13, %s4107_s13, %s4106_s30  }
  0x22   : > { %s371_s21 = sshll.u32 %s3552_s24, 4  ;;  %s397_s23 = sshll.u32 %s4093_s8, 4  ;;  %s372_s21 = int_to_ptr.vmem [resolvable:$true] %s371_s21  ;;  %s398_s23 = int_to_ptr.hbm [resolvable:$true] %s397_s23 }
  0x23   : > { %3069 = dma.hbm_to_vmem [thread:$0]  (!%p3654_p5), %s370_s28, 1024, %s372_s21, [#allocation10], %s4107_s13, %s4107_s13, %s4106_s30  }
  0x24   : > { %s3553_s19 = smov [#allocation14]   ;;  %s423_s27 = sshll.u32 %s4095_s10, 4  ;;  %s424_s27 = int_to_ptr.hbm [resolvable:$true] %s423_s27 }
  0x25   : > { %s399_s22 = sshll.u32 %s3553_s19, 4  ;;  %s3554_s20 = smov 768   ;;  %s400_s22 = int_to_ptr.vmem [resolvable:$true] %s399_s22 }
  0x26   : > { %s3555_s16 = smov 48   ;;  %s3556_s24 = smov [#allocation17]  }
  0x27   : > { %3075 = dma.hbm_to_vmem [thread:$0]  (!%p3654_p5), %s398_s23, 6144, %s400_s22, [#allocation13], %s3554_s20, %s3554_s20, %s3555_s16  }
  0x28   : > { %s425_s14 = sshll.u32 %s3556_s24, 4  ;;  %s3557_s26 = smov 64   ;;  %s426_s14 = int_to_ptr.vmem [resolvable:$true] %s425_s14 }
  0x29   : > { %s3558_s2 = smov 4   ;;  %451 = sbr.rel (%p3643_p3) target bundleno = 1909 (0x775), region = 64 }
  0x2a   : > { %3081 = dma.hbm_to_vmem [thread:$0]  (!%p3654_p5), %s424_s27, 6144, %s426_s14, [#allocation16], %s3557_s26, %s3557_s26, %s3558_s2  }
  0x2e   : > { %3518 = dma.done.wait (%p3082_p2), [#allocation5], 1024  }
  0x2f   : > { %3520 = vsyncadd (%p3082_p2), [#allocation5], 4294966272 }
  0x30   : > { %3522 = dma.done.wait (%p3082_p2), [#allocation7], 1024  }
  0x31   : > { %3524 = vsyncadd (%p3082_p2), [#allocation7], 4294966272 }
  0x32   : > { %3526 = dma.done.wait (%p3082_p2), [#allocation10], 2048  }
  0x33   : > { %3528 = vsyncadd (%p3082_p2), [#allocation10], 4294965248 }
  0x34   : > { %3530 = dma.done.wait (%p3082_p2), [#allocation13], 12288  }
  0x35   : > { %3532 = vsyncadd (%p3082_p2), [#allocation13], 4294955008 }
  0x36   : > { %3534 = dma.done.wait (%p3082_p2), [#allocation16], 6208  }
  0x37   : > { %3536 = vsyncadd (%p3082_p2), [#allocation16], 4294961088  ;;  %v538_v0 = vlaneseq  ;;  %s2451_s2 = sshll.u32 %s3635_s0, 7  ;;  %v604_v2 = vld [vmem:[#allocation4 + $0x38] sm:$0xff]  ;;  %v603_v3 = vld [vmem:[#allocation4 + $0x30] sm:$0xff]  ;;  %v3559_v7 = vmov 0.0  }
  0x38   : > { %s541_s29 = sld [smem:[#allocation3 + %s2451_s2]]  ;;  %s547_s17 = sadd.s32 1, %s2451_s2  ;;  %617 = vmatpush.msra.mxu0 %v604_v2  ;;  %v602_v6 = vld [vmem:[#allocation4 + $0x28] sm:$0xff]  ;;  %v632_v10 = vld [vmem:[#allocation6 + $0x18] sm:$0xff]  ;;  %v631_v13 = vld [vmem:[#allocation6 + $0x10] sm:$0xff]  ;;  %vm605_vm8 = vcmask 523264  }
  0x39   : > { %s548_s30 = sld [smem:[#allocation3 + %s547_s17]]  ;;  %s554_s13 = sadd.s32 2, %s2451_s2  ;;  %v3736_v1 = vand.u32 127, %v538_v0  ;;  %649 = vmatpush.msra.mxu3 %v632_v10  ;;  %v601_v14 = vld [vmem:[#allocation4 + $0x20] sm:$0xff]  ;;  %v630_v18 = vld [vmem:[#allocation6 + $0x8] sm:$0xff]  ;;  %v600_v21 = vld [vmem:[#allocation4 + $0x18] sm:$0xff] }
  0x3a   : > { %s555_s28 = sld [smem:[#allocation3 + %s554_s13]]  ;;  %s561_s21 = sadd.s32 3, %s2451_s2  ;;  %618 = vmatpush.msra.mxu0 %v603_v3  ;;  %v599_v26 = vld [vmem:[#allocation4 + $0x10] sm:$0xff]  ;;  %v598_v29 = vld [vmem:[#allocation4 + $0x8] sm:$0xff]  ;;  %v597_v32 = vld [vmem:[#allocation4] sm:$0xff]  ;;  %vm633_vm9 = vcmask 261120  }
  0x3b   : > { %s562_s23 = sld [smem:[#allocation3 + %s561_s21]]  ;;  %s568_s19 = sadd.s32 4, %s2451_s2  ;;  %650 = vmatpush.msra.mxu3 %v631_v13  ;;  %v629_v38 = vld [vmem:[#allocation6] sm:$0xff]  ;;  %v663_v39 = vld [vmem:[#allocation8 + $0x18] sm:$0xff]  ;;  %v662_v41 = vld [vmem:[#allocation8 + $0x10] sm:$0xff]  ;;  %vm728_vm10 = vcmask 1043456  }
  0x3c   : > { %s3738_s22 = sld [smem:[#allocation3 + %s568_s19]]  ;;  %s575_s15 = sadd.s32 5, %s2451_s2  ;;  %619 = vmatpush.msra.mxu0 %v602_v6  ;;  %679 = vmatpush.msra.mxu2 %v663_v39  ;;  %v661_v42 = vld [vmem:[#allocation8 + $0x8] sm:$0xff]  ;;  %v660_v43 = vld [vmem:[#allocation8] sm:$0xff]  ;;  %vm703_vm11 = vcmask 31744   ;;  %v689_v51 = vld [vmem:[#allocation11 + $0x10] sm:$0xff] }
  0x3d   : > { %s3740_s18 = sld [smem:[#allocation3 + %s575_s15]]  ;;  %s582_s27 = sadd.s32 6, %s2451_s2  ;;  %651 = vmatpush.msra.mxu3 %v630_v18  ;;  %v687_v48 = vld [vmem:[#allocation11] sm:$0xff]  ;;  %v688_v50 = vld [vmem:[#allocation11 + $0x8] sm:$0xff]  ;;  %v690_v52 = vld [vmem:[#allocation11 + $0x18] sm:$0xff] }
  0x3e   : > { %v542_v4 = vstv %s541_s29  ;;  %s3742_s20 = sld [smem:[#allocation3 + %s582_s27]]  ;;  %s589_s16 = sadd.s32 7, %s2451_s2  ;;  %620 = vmatpush.msra.mxu0 %v601_v14  ;;  %680 = vmatpush.msra.mxu2 %v662_v41  ;;  %v691_v53 = vld [vmem:[#allocation11 + $0x20] sm:$0xff]  ;;  %v692_v54 = vld [vmem:[#allocation11 + $0x28] sm:$0xff]  ;;  %v693_v55 = vld [vmem:[#allocation11 + $0x30] sm:$0xff] }
  0x3f   : > { %vm543_vm0 = vcmp.eq.s32.totalorder %v3736_v1, %v542_v4  ;;  %v549_v5 = vstv %s548_s30  ;;  %s3745_s24 = sld [smem:[#allocation3 + %s589_s16]]  ;;  %652 = vmatpush.msra.mxu3 %v629_v38  ;;  %p530_p6 = scmp.lt.s32.totalorder %s3635_s0, 1  ;;  %v694_v56 = vld [vmem:[#allocation11 + $0x38] sm:$0xff]  ;;  %v695_v57 = vld [vmem:[#allocation9] sm:$0xff]  ;;  %v696_v60 = vld [vmem:[#allocation9 + $0x8] sm:$0xff] }
  0x40   : > { %v2452_v8 = vsel %vm543_vm0, 1.0, %v3559_v7  ;;  %vm550_vm1 = vcmp.eq.s32.totalorder %v3736_v1, %v549_v5  ;;  %v556_v9 = vstv %s555_s28  ;;  %621 = vmatpush.msra.mxu0 %v600_v21  ;;  %681 = vmatpush.msra.mxu2 %v661_v42  ;;  %v697_v63 = vld [vmem:[#allocation9 + $0x10] sm:$0xff]  ;;  %v698_v4 = vld [vmem:[#allocation9 + $0x18] sm:$0xff] }
  0x41   : > { %v2453_v11 = vsel %vm550_vm1, 1.0, %v3559_v7  ;;  %vm557_vm2 = vcmp.eq.s32.totalorder %v3736_v1, %v556_v9  ;;  %v563_v12 = vstv %s562_s23  ;;  %s4115_s0 = smov (!%p530_p6, %s3635_s0), 1  ;;  %v701_v14 = vld [vmem:[#allocation9 + $0x30] sm:$0xff] }
  0x42   : > { %v553_v15 = vadd.f32 %v2453_v11, %v2452_v8  ;;  %v2454_v16 = vsel %vm557_vm2, 1.0, %v3559_v7  ;;  %vm564_vm3 = vcmp.eq.s32.totalorder %v3736_v1, %v563_v12  ;;  %v570_v17 = vstv %s3738_s22  ;;  %622 = vmatpush.msra.mxu0 %v599_v26  ;;  %682 = vmatpush.msra.mxu2 %v660_v43  ;;  %s2450_s14 = sshll.u32 %s4115_s0, 2  ;;  %v699_v8 = vld [vmem:[#allocation9 + $0x20] sm:$0xff]  ;;  %v700_v11 = vld [vmem:[#allocation9 + $0x28] sm:$0xff]  ;;  %s3017_s13 = smul.u32 6, %s4115_s0 }
  0x43   : > { %v2455_v19 = vsel %vm564_vm3, 1.0, %v3559_v7  ;;  %vm571_vm4 = vcmp.eq.s32.totalorder %v3736_v1, %v570_v17  ;;  %v577_v20 = vstv %s3740_s18  ;;  %s533_s29 = scalar_lea.vmem %s4086_s1, %s2450_s14 }
  0x44   : > { %v560_v22 = vadd.f32 %v2454_v16, %v553_v15  ;;  %vm578_vm5 = vcmp.eq.s32.totalorder %v3736_v1, %v577_v20  ;;  %v584_v23 = vstv %s3742_s20  ;;  %v2456_v24 = vsel %vm571_vm4, 1.0, %v3559_v7  ;;  %623 = vmatpush.msra.mxu0 %v598_v29  ;;  %v657_v45 = vld [vmem:[%s533_s29] sm:$0xf]  ;;  %s537_s23 = scalar_lea.vmem %s4097_s12, %s3017_s13 }
  0x45   : > { %v591_v25 = vstv %s3745_s24  ;;  %vm585_vm6 = vcmp.eq.s32.totalorder %v3736_v1, %v584_v23  ;;  %v2457_v28 = vsel %vm578_vm5, 1.0, %v3559_v7 }
  0x46   : > { %v567_v27 = vadd.f32 %v2455_v19, %v560_v22  ;;  %vm592_vm7 = vcmp.eq.s32.totalorder %v3736_v1, %v591_v25  ;;  %v2458_v31 = vsel %vm585_vm6, 1.0, %v3559_v7  ;;  %624 = vmatpush.msra.mxu0 %v597_v32  ;;  %v702_v22 = vld [vmem:[#allocation9 + $0x38] sm:$0xff] }
  0x47   : > { %v2459_v34 = vsel %vm592_vm7, 1.0, %v3559_v7 }
  0x48   : > { %v574_v30 = vadd.f32 %v2456_v24, %v567_v27 }
  0x4a   : > { %v581_v33 = vadd.f32 %v2457_v28, %v574_v30 }
  0x4c   : > { %v588_v35 = vadd.f32 %v2458_v31, %v581_v33 }
  0x4e   : > { %v595_v36 = vadd.f32 %v2459_v34, %v588_v35 }
  0x50   : > { %v596_v37 = vmul.f32 0.125, %v595_v36 }
  0x52   : > { %2460 = vmatmul.msk.f32.vlgmr.msra.gmra.mxu0 %vm605_vm8, %v596_v37 }
  0xcf   : > { %v626_v40 = vpop.f32.mrf.mxu0 }
  0xd0   : > { %2461 = vmatmul.msk.f32.vlgmr.msra.gmra.mxu3 %vm633_vm9, %v626_v40 }
 0x153   : > { %v3776_v44 = vpop.f32.mrf.mxu3 }
 0x154   : > { %v658_v46 = vperm.slane %v3776_v44, 0 }
 0x156   : > { %v659_v47 = vadd.f32 %v658_v46, %v657_v45 }
 0x158   : > { %2462 = vmatmul.msk.f32.vlgmr.msra.gmra.mxu2 %vm633_vm9, %v659_v47 }
 0x1db   : > { %v684_v49 = vpop.f32.mrf.mxu2 }
 0x1dc   : > { %2463 = vmatpush.msk.msrb.mxu3 %vm728_vm10, %v684_v49 }
 0x1dd   : > { %2464 = vmatmul.msk.f32.vlgmr.msrb.gmra.mxu3 %vm703_vm11, %v687_v48 }
 0x1e5   : > { %2465 = vmatmul.msk.f32.gmra.mxu3 %vm703_vm11, %v688_v50 }
 0x1ed   : > { %2466 = vmatmul.msk.f32.gmra.mxu3 %vm703_vm11, %v689_v51 }
 0x1f5   : > { %2467 = vmatmul.msk.f32.gmra.mxu3 %vm703_vm11, %v690_v52 }
 0x1fd   : > { %2468 = vmatmul.msk.f32.gmra.mxu3 %vm703_vm11, %v691_v53 }
 0x205   : > { %2469 = vmatmul.msk.f32.gmra.mxu3 %vm703_vm11, %v692_v54 }
 0x20d   : > { %2470 = vmatmul.msk.f32.gmra.mxu3 %vm703_vm11, %v693_v55 }
 0x215   : > { %2471 = vmatmul.msk.f32.gmra.mxu3 %vm703_vm11, %v694_v56 }
 0x260   : > { %v749_v58 = vpop.f32.mrf.mxu3 }
 0x261   : > { %v750_v59 = vadd.f32 %v749_v58, %v695_v57 }
 0x263   : > { %773 = vmax.xlane.f32.xlu0 %v750_v59 }
 0x268   : > { %v752_v61 = vpop.f32.mrf.mxu3 }
 0x269   : > { %v753_v62 = vadd.f32 %v752_v61, %v696_v60 }
 0x26b   : > { %775 = vmax.xlane.f32.xlu0 %v753_v62 }
 0x270   : > { %v755_v2 = vpop.f32.mrf.mxu3 }
 0x271   : > { %v756_v3 = vadd.f32 %v755_v2, %v697_v63 }
 0x273   : > { %777 = vmax.xlane.f32.xlu1 %v756_v3 }
 0x278   : > { %v758_v5 = vpop.f32.mrf.mxu3 }
 0x279   : > { %v759_v6 = vadd.f32 %v758_v5, %v698_v4  ;;  %v2650_v4 = vld [vmem:[#allocation12 + $0x150] sm:$0xf]  ;;  %v2966_v5 = vld [vmem:[#allocation12 + $0x164] sm:$0xf0] }
 0x27b   : > { %779 = vmax.xlane.f32.xlu1 %v759_v6 }
 0x280   : > { %v761_v9 = vpop.f32.mrf.mxu3 }
 0x281   : > { %v762_v10 = vadd.f32 %v761_v9, %v699_v8  ;;  %v2963_v8 = vld [vmem:[#allocation12 + $0x154] sm:$0xf]  ;;  %v2652_v9 = vld [vmem:[#allocation12 + $0x168] sm:$0xf0] }
 0x283   : > { %781 = vmax.xlane.f32.xlu2 %v762_v10 }
 0x288   : > { %v764_v12 = vpop.f32.mrf.mxu3 }
 0x289   : > { %v765_v13 = vadd.f32 %v764_v12, %v700_v11  ;;  %v2655_v11 = vor.u32 %v2963_v8, %v2652_v9  ;;  %v2967_v12 = vld [vmem:[#allocation12 + $0x16c] sm:$0xf0] }
 0x28b   : > { %783 = vmax.xlane.f32.xlu2 %v765_v13  ;;  %1262 = vmatpush.bf16.msrb.mxu2 %v2655_v11  ;;  %v2939_v11 = vld [vmem:[#allocation12 + $0x94] sm:$0xf] }
 0x290   : > { %v767_v15 = vpop.f32.mrf.mxu3 }
 0x291   : > { %v768_v16 = vadd.f32 %v767_v15, %v701_v14  ;;  %v2660_v14 = vld [vmem:[#allocation12 + $0x170] sm:$0xf0] }
 0x293   : > { %785 = vmax.xlane.f32.xlu2 %v768_v16 }
 0x298   : > { %v770_v23 = vpop.f32.mrf.mxu3 }
 0x299   : > { %v771_v25 = vadd.f32 %v770_v23, %v702_v22  ;;  %v2634_v22 = vld [vmem:[#allocation12 + $0x128] sm:$0xf]  ;;  %v2961_v23 = vld [vmem:[#allocation12 + $0x13c] sm:$0xf0] }
 0x2d6   : > { %v774_v17 = vpop.xlane.xlu0 %773 }
 0x2d7   : > { %vm789_vm12 = vcmp.ge.f32.partialorder %v750_v59, %v774_v17  ;;  %v2626_v17 = vld [vmem:[#allocation12 + $0x120] sm:$0xf] }
 0x2d8   : > { %v797_v18 = vsel %vm789_vm12, %v3736_v1, 128  ;;  %vm2165_vm12 = vcmask 253952  }
 0x2d9   : > { %v806_v19 = vshra.s32 %v797_v18, 16  ;;  %v805_v49 = vand.u32 65535, %v797_v18  ;;  %v2960_v18 = vld [vmem:[#allocation12 + $0x134] sm:$0xf0] }
 0x2db   : > { %v808_v20 = vcvt.s32.f32 %v806_v19  ;;  %v807_v51 = vcvt.s32.f32 %v805_v49  ;;  %v2957_v19 = vld [vmem:[#allocation12 + $0x124] sm:$0xf]  ;;  %v2952_v49 = vld [vmem:[#allocation12 + $0xfc] sm:$0xf] }
 0x2dd   : > { %809 = vmin.xlane.f32.xlu0 %v808_v20 }
 0x2de   : > { %v776_v21 = vpop.xlane.xlu0 %775 }
 0x2df   : > { %vm790_vm13 = vcmp.ge.f32.partialorder %v753_v62, %v776_v21  ;;  %v2628_v21 = vld [vmem:[#allocation12 + $0x138] sm:$0xf0] }
 0x2e0   : > { %v798_v24 = vsel %vm790_vm13, %v3736_v1, 128 }
 0x2e1   : > { %v820_v26 = vshra.s32 %v798_v24, 16  ;;  %v819_v53 = vand.u32 65535, %v798_v24 }
 0x2e3   : > { %v822_v27 = vcvt.s32.f32 %v820_v26  ;;  %v821_v56 = vcvt.s32.f32 %v819_v53  ;;  %v2631_v26 = vor.u32 %v2957_v19, %v2628_v21  ;;  %v2578_v53 = vld [vmem:[#allocation12 + $0xc0] sm:$0xf] }
 0x2e5   : > { %787 = vmax.xlane.f32.xlu0 %v771_v25  ;;  %823 = vmin.xlane.f32.xlu1 %v822_v27 }
 0x2e6   : > { %v778_v28 = vpop.xlane.xlu1 %777  ;;  %1263 = vmatpush.bf16.msrb.mxu2 %v2631_v26 }
 0x2e7   : > { %vm791_vm14 = vcmp.ge.f32.partialorder %v756_v3, %v778_v28  ;;  %v2958_v28 = vld [vmem:[#allocation12 + $0x12c] sm:$0xf] }
 0x2e8   : > { %v799_v29 = vsel %vm791_vm14, %v3736_v1, 128 }
 0x2e9   : > { %v834_v30 = vshra.s32 %v799_v29, 16  ;;  %v833_v60 = vand.u32 65535, %v799_v29  ;;  %v2636_v29 = vld [vmem:[#allocation12 + $0x140] sm:$0xf0] }
 0x2eb   : > { %v836_v31 = vcvt.s32.f32 %v834_v30  ;;  %v835_v63 = vcvt.s32.f32 %v833_v60  ;;  %v2602_v30 = vld [vmem:[#allocation12 + $0xf0] sm:$0xf]  ;;  %v2949_v60 = vld [vmem:[#allocation12 + $0xdc] sm:$0xf0] }
 0x2ed   : > { %837 = vmin.xlane.f32.xlu1 %v836_v31 }
 0x2ee   : > { %v780_v32 = vpop.xlane.xlu1 %779 }
 0x2ef   : > { %vm792_vm15 = vcmp.ge.f32.partialorder %v759_v6, %v780_v32  ;;  %v2651_v6 = vor.u32 %v2966_v5, %v2650_v4  ;;  %v2954_v32 = vld [vmem:[#allocation12 + $0x104] sm:$0xf0]  ;;  %v2554_v4 = vld [vmem:[#allocation12 + $0x90] sm:$0xf] }
 0x2f0   : > { %v3793_v33 = vsel %vm792_vm15, %v3736_v1, 128  ;;  %v2942_v5 = vld [vmem:[#allocation12 + $0xa4] sm:$0xf0] }
 0x2f1   : > { %v848_v34 = vshra.s32 %v3793_v33, 16  ;;  %v847_v3 = vand.u32 65535, %v3793_v33  ;;  %1233 = vmatpush.bf16.msra.mxu1 %v2651_v6  ;;  %v2951_v33 = vld [vmem:[#allocation12 + $0xf4] sm:$0xf] }
 0x2f3   : > { %v3796_v35 = vcvt.s32.f32 %v848_v34  ;;  %v2604_v34 = vld [vmem:[#allocation12 + $0x108] sm:$0xf0] }
 0x2f5   : > { %851 = vmin.xlane.f32.xlu2 %v3796_v35 }
 0x2f6   : > { %v782_v36 = vpop.xlane.xlu2 %781 }
 0x2f7   : > { %vm793_vm0 = vcmp.ge.f32.partialorder %v762_v10, %v782_v36  ;;  %v2658_v10 = vld [vmem:[#allocation12 + $0x158] sm:$0xf] }
 0x2f8   : > { %v3800_v37 = vsel %vm793_vm0, %v3736_v1, 128  ;;  %v2659_v15 = vor.u32 %v2967_v12, %v2658_v10  ;;  %v2556_v12 = vld [vmem:[#allocation12 + $0xa8] sm:$0xf0] }
 0x2f9   : > { %v862_v38 = vshra.s32 %v3800_v37, 16  ;;  %v2559_v19 = vor.u32 %v2939_v11, %v2556_v12  ;;  %v2922_v12 = vld [vmem:[#allocation12 + $0xc] sm:$0xf] }
 0x2fa   : > { %1291 = vmatpush.bf16.msrb.mxu0 %v2659_v15  ;;  %v2940_v15 = vld [vmem:[#allocation12 + $0x9c] sm:$0xf] }
 0x2fb   : > { %v3803_v39 = vcvt.s32.f32 %v862_v38  ;;  %v2603_v38 = vor.u32 %v2954_v32, %v2602_v30  ;;  %v2933_v32 = vld [vmem:[#allocation12 + $0x64] sm:$0xf] }
 0x2fd   : > { %865 = vmin.xlane.f32.xlu0 %v3803_v39 }
 0x2fe   : > { %v784_v40 = vpop.xlane.xlu2 %783 }
 0x2ff   : > { %vm794_vm1 = vcmp.ge.f32.partialorder %v765_v13, %v784_v40  ;;  %v2964_v13 = vld [vmem:[#allocation12 + $0x15c] sm:$0xf]  ;;  %v2610_v40 = vld [vmem:[#allocation12 + $0xf8] sm:$0xf] }
 0x300   : > { %v3807_v41 = vsel %vm794_vm1, %v3736_v1, 128 }
 0x301   : > { %v876_v42 = vshra.s32 %v3807_v41, 16 }
 0x303   : > { %v3810_v43 = vcvt.s32.f32 %v876_v42  ;;  %v2955_v42 = vld [vmem:[#allocation12 + $0x10c] sm:$0xf0] }
 0x305   : > { %879 = vmin.xlane.f32.xlu1 %v3810_v43 }
 0x306   : > { %v786_v45 = vpop.xlane.xlu2 %785 }
 0x307   : > { %vm795_vm2 = vcmp.ge.f32.partialorder %v768_v16, %v786_v45  ;;  %v2663_v16 = vor.u32 %v2964_v13, %v2660_v14  ;;  %v861_v45 = vand.u32 65535, %v3800_v37  ;;  %v2562_v13 = vld [vmem:[#allocation12 + $0x98] sm:$0xf]  ;;  %v2943_v14 = vld [vmem:[#allocation12 + $0xac] sm:$0xf0] }
 0x308   : > { %v3814_v46 = vsel %vm795_vm2, %v3736_v1, 128  ;;  %v2563_v21 = vor.u32 %v2943_v14, %v2562_v13  ;;  %v2492_v13 = vld [vmem:[#allocation12 + $0x20] sm:$0xf0] }
 0x309   : > { %v890_v47 = vshra.s32 %v3814_v46, 16  ;;  %1320 = vmatpush.bf16.msra.mxu3 %v2663_v16  ;;  %v863_v8 = vcvt.s32.f32 %v861_v45  ;;  %v2564_v16 = vld [vmem:[#allocation12 + $0xb0] sm:$0xf0]  ;;  %v889_v26 = vand.u32 65535, %v3814_v46  ;;  %v2538_v46 = vld [vmem:[#allocation12 + $0x68] sm:$0xf]  ;;  %v2495_v14 = vor.u32 %v2922_v12, %v2492_v13 }
 0x30a   : > { %v2540_v45 = vld [vmem:[#allocation12 + $0x80] sm:$0xf0]  ;;  %v2594_v13 = vld [vmem:[#allocation12 + $0xd0] sm:$0xf] }
 0x30b   : > { %v3817_v48 = vcvt.s32.f32 %v890_v47  ;;  %v2607_v47 = vor.u32 %v2951_v33, %v2604_v34  ;;  %v2532_v34 = vld [vmem:[#allocation12 + $0x78] sm:$0xf0] }
 0x30d   : > { %893 = vmin.xlane.f32.xlu1 %v3817_v48  ;;  %1264 = vmatpush.bf16.msrb.mxu2 %v2607_v47 }
 0x350   : > { %v3820_v50 = vpop.xlane.xlu0 %809 }
 0x351   : > { %vm811_vm3 = vcmp.eq.f32.partialorder %v808_v20, %v3820_v50  ;;  %v2627_v20 = vor.u32 %v2960_v18, %v2626_v17  ;;  %v2555_v18 = vor.u32 %v2942_v5, %v2554_v4  ;;  %v2484_v5 = vld [vmem:[#allocation12 + $0x18] sm:$0xf0] }
 0x352   : > { %v812_v52 = vsel %vm811_vm3, %v807_v51, inf  ;;  %v2612_v51 = vld [vmem:[#allocation12 + $0x110] sm:$0xf0] }
 0x353   : > { %813 = vmin.xlane.f32.xlu2 %v812_v52  ;;  %1234 = vmatpush.bf16.msra.mxu1 %v2627_v20  ;;  %v2611_v52 = vor.u32 %v2955_v42, %v2610_v40  ;;  %v875_v20 = vand.u32 65535, %v3807_v41  ;;  %v2164_v41 = vmul.f32 %v3776_v44, %v3776_v44  ;;  %v2934_v42 = vld [vmem:[#allocation12 + $0x6c] sm:$0xf] }
 0x354   : > { %v2543_v47 = vor.u32 %v2934_v42, %v2540_v45  ;;  %v2666_v42 = vld [vmem:[#allocation12 + $0x160] sm:$0xf] }
 0x355   : > { %v2166_v30 = vsel %vm2165_vm12, %v2164_v41, 0.0 }
 0x357   : > { %1235 = vmatpush.bf16.msra.mxu1 %v2603_v38  ;;  %v2535_v38 = vor.u32 %v2933_v32, %v2532_v34 }
 0x358   : > { %v3823_v54 = vpop.xlane.xlu1 %823  ;;  %v788_v55 = vpop.xlane.xlu0 %787 }
 0x359   : > { %vm796_vm4 = vcmp.ge.f32.partialorder %v771_v25, %v788_v55  ;;  %vm825_vm5 = vcmp.eq.f32.partialorder %v822_v27, %v3823_v54  ;;  %v849_v25 = vcvt.s32.f32 %v847_v3  ;;  %v2635_v27 = vor.u32 %v2961_v23, %v2634_v22  ;;  %v2948_v55 = vld [vmem:[#allocation12 + $0xd4] sm:$0xf0]  ;;  %v2588_v3 = vld [vmem:[#allocation12 + $0xe0] sm:$0xf0] }
 0x35a   : > { %v3827_v57 = vsel %vm796_vm4, %v3736_v1, 128  ;;  %v826_v58 = vsel %vm825_vm5, %v821_v56, inf  ;;  %v2945_v56 = vld [vmem:[#allocation12 + $0xc4] sm:$0xf]  ;;  %v2567_v22 = vor.u32 %v2940_v15, %v2564_v16  ;;  %v816_v16 = vcvt.f32.s32 %v3820_v50 }
 0x35b   : > { %827 = vmin.xlane.f32.xlu0 %v826_v58  ;;  %v904_v59 = vshra.s32 %v3827_v57, 16  ;;  %1292 = vmatpush.bf16.msrb.mxu0 %v2635_v27  ;;  %v2580_v58 = vld [vmem:[#allocation12 + $0xd8] sm:$0xf0] }
 0x35c   : > { %v2583_v37 = vor.u32 %v2945_v56, %v2580_v58 }
 0x35d   : > { %v3830_v61 = vcvt.s32.f32 %v904_v59  ;;  %v2586_v59 = vld [vmem:[#allocation12 + $0xc8] sm:$0xf] }
 0x35e   : > { %v2587_v9 = vor.u32 %v2949_v60, %v2586_v59  ;;  %1265 = vmatpush.bf16.msrb.mxu2 %v2583_v37  ;;  %v2928_v59 = vld [vmem:[#allocation12 + $0x3c] sm:$0xf]  ;;  %v2516_v60 = vld [vmem:[#allocation12 + $0x50] sm:$0xf0]  ;;  %v2921_v37 = vld [vmem:[#allocation12 + $0x4] sm:$0xf] }
 0x35f   : > { %907 = vmin.xlane.f32.xlu2 %v3830_v61  ;;  %1293 = vmatpush.bf16.msrb.mxu0 %v2611_v52 }
 0x360   : > { %v3833_v62 = vpop.xlane.xlu1 %837 }
 0x361   : > { %vm839_vm6 = vcmp.eq.f32.partialorder %v836_v31, %v3833_v62  ;;  %v2639_v31 = vor.u32 %v2958_v28, %v2636_v29  ;;  %v891_v28 = vcvt.s32.f32 %v889_v26 }
 0x362   : > { %v840_v2 = vsel %vm839_vm6, %v835_v63, inf  ;;  %v2579_v63 = vor.u32 %v2948_v55, %v2578_v53  ;;  %1266 = vmatpush.bf16.msrb.mxu2 %v2559_v19  ;;  %v2514_v53 = vld [vmem:[#allocation12 + $0x38] sm:$0xf]  ;;  %v2931_v55 = vld [vmem:[#allocation12 + $0x4c] sm:$0xf0]  ;;  %v817_v19 = vshll.u32 %v816_v16, 16 }
 0x363   : > { %841 = vmin.xlane.f32.xlu0 %v840_v2  ;;  %1321 = vmatpush.bf16.msra.mxu3 %v2639_v31  ;;  %v2946_v2 = vld [vmem:[#allocation12 + $0xcc] sm:$0xf]  ;;  %v2530_v31 = vld [vmem:[#allocation12 + $0x60] sm:$0xf]  ;;  %v2515_v58 = vor.u32 %v2931_v55, %v2514_v53  ;;  %v2962_v53 = vld [vmem:[#allocation12 + $0x144] sm:$0xf0] }
 0x364   : > { %v2591_v10 = vor.u32 %v2946_v2, %v2588_v3  ;;  %1236 = vmatpush.bf16.msra.mxu1 %v2579_v63  ;;  %1294 = vmatpush.bf16.msrb.mxu0 %v2587_v9  ;;  %v2519_v63 = vor.u32 %v2928_v59, %v2516_v60  ;;  %v2482_v2 = vld [vmem:[#allocation12] sm:$0xf]  ;;  %v2924_v3 = vld [vmem:[#allocation12 + $0x14] sm:$0xf0]  ;;  %v2953_v60 = vld [vmem:[#allocation12 + $0x104] sm:$0xf] }
 0x365   : > { %v2483_v4 = vor.u32 %v2924_v3, %v2482_v2  ;;  %v2925_v9 = vld [vmem:[#allocation12 + $0x1c] sm:$0xf0] }
 0x366   : > { %1267 = vmatpush.bf16.msrb.mxu2 %v2535_v38  ;;  %v2618_v3 = vld [vmem:[#allocation12 + $0x100] sm:$0xf] }
 0x368   : > { %v3837_v24 = vpop.xlane.xlu2 %851  ;;  %1237 = vmatpush.bf16.msra.mxu1 %v2555_v18  ;;  %1295 = vmatpush.bf16.msrb.mxu0 %v2563_v21 }
 0x369   : > { %vm853_vm7 = vcmp.eq.f32.partialorder %v3796_v35, %v3837_v24  ;;  %v2615_v35 = vor.u32 %v2952_v49, %v2612_v51  ;;  %v2930_v49 = vld [vmem:[#allocation12 + $0x44] sm:$0xf0]  ;;  %v2927_v51 = vld [vmem:[#allocation12 + $0x34] sm:$0xf] }
 0x36a   : > { %v854_v36 = vsel %vm853_vm7, %v849_v25, inf }
 0x36b   : > { %855 = vmin.xlane.f32.xlu1 %v854_v36  ;;  %1322 = vmatpush.bf16.msra.mxu3 %v2615_v35  ;;  %v2937_v36 = vld [vmem:[#allocation12 + $0x7c] sm:$0xf0]  ;;  %v2508_v35 = vld [vmem:[#allocation12 + $0x48] sm:$0xf0] }
 0x36c   : > { %v2539_v40 = vor.u32 %v2937_v36, %v2538_v46  ;;  %v2511_v56 = vor.u32 %v2927_v51, %v2508_v35  ;;  %v2644_v51 = vld [vmem:[#allocation12 + $0x148] sm:$0xf0]  ;;  %v2642_v35 = vld [vmem:[#allocation12 + $0x130] sm:$0xf] }
 0x36d   : > { %v2643_v59 = vor.u32 %v2962_v53, %v2642_v35 }
 0x36e   : > { %1296 = vmatpush.bf16.msrb.mxu0 %v2539_v40  ;;  %1268 = vmatpush.bf16.msrb.mxu2 %v2511_v56  ;;  %v2668_v40 = vld [vmem:[#allocation12 + $0x178] sm:$0xf0] }
 0x36f   : > { %1323 = vmatpush.bf16.msra.mxu3 %v2591_v10  ;;  %v2487_v10 = vor.u32 %v2921_v37, %v2484_v5  ;;  %v2956_v37 = vld [vmem:[#allocation12 + $0x114] sm:$0xf0] }
 0x370   : > { %v3842_v6 = vpop.xlane.xlu0 %865 }
 0x371   : > { %vm867_vm9 = vcmp.eq.f32.partialorder %v3803_v39, %v3842_v6  ;;  %v877_v39 = vcvt.s32.f32 %v875_v20  ;;  %v903_v20 = vand.u32 65535, %v3827_v57  ;;  %v3560_v57 = vmov 1.0|1.0  }
 0x372   : > { %v868_v17 = vsel %vm867_vm9, %v863_v8, inf  ;;  %1297 = vmatpush.bf16.msrb.mxu0 %v2515_v58  ;;  %v2490_v8 = vld [vmem:[#allocation12 + $0x8] sm:$0xf]  ;;  %1269 = vmatpush.bf16.msrb.mxu2 %v2487_v10  ;;  %v872_v45 = vcvt.f32.s32 %v3842_v6  ;;  %v2619_v10 = vor.u32 %v2956_v37, %v2618_v3 }
 0x373   : > { %869 = vmin.xlane.f32.xlu2 %v868_v17  ;;  %1324 = vmatpush.bf16.msra.mxu3 %v2567_v22  ;;  %v2491_v11 = vor.u32 %v2925_v9, %v2490_v8  ;;  %v830_v17 = vcvt.f32.s32 %v3823_v54 }
 0x374   : > { %v873_v2 = vshll.u32 %v872_v45, 16 }
 0x375   : > { %v831_v22 = vshll.u32 %v830_v17, 16 }
 0x376   : > { %1298 = vmatpush.bf16.msrb.mxu0 %v2491_v11  ;;  %v2947_v11 = vld [vmem:[#allocation12 + $0xd4] sm:$0xf] }
 0x377   : > { %1325 = vmatpush.bf16.msra.mxu3 %v2543_v47 }
 0x378   : > { %v3847_v23 = vpop.xlane.xlu1 %879 }
 0x379   : > { %vm881_vm11 = vcmp.eq.f32.partialorder %v3810_v43, %v3847_v23  ;;  %v2936_v43 = vld [vmem:[#allocation12 + $0x74] sm:$0xf0]  ;;  %v886_v55 = vcvt.f32.s32 %v3847_v23  ;;  %v2596_v23 = vld [vmem:[#allocation12 + $0xe8] sm:$0xf0] }
 0x37a   : > { %v882_v25 = vsel %vm881_vm11, %v877_v39, inf  ;;  %v2531_v33 = vor.u32 %v2936_v43, %v2530_v31 }
 0x37b   : > { %883 = vmin.xlane.f32.xlu0 %v882_v25  ;;  %1326 = vmatpush.bf16.msra.mxu3 %v2519_v63  ;;  %v2620_v63 = vld [vmem:[#allocation12 + $0x118] sm:$0xf0] }
 0x37c   : > { %1238 = vmatpush.bf16.msra.mxu1 %v2531_v33  ;;  %v2623_v9 = vor.u32 %v2953_v60, %v2620_v63 }
 0x37f   : > { %1327 = vmatpush.bf16.msra.mxu3 %v2495_v14  ;;  %v2950_v14 = vld [vmem:[#allocation12 + $0xe4] sm:$0xf0] }
 0x380   : > { %v3854_v27 = vpop.xlane.xlu1 %893  ;;  %v2595_v17 = vor.u32 %v2950_v14, %v2594_v13 }
 0x381   : > { %vm895_vm13 = vcmp.eq.f32.partialorder %v3817_v48, %v3854_v27  ;;  %v2506_v48 = vld [vmem:[#allocation12 + $0x30] sm:$0xf] }
 0x382   : > { %v896_v29 = vsel %vm895_vm13, %v891_v28, inf  ;;  %v2507_v52 = vor.u32 %v2930_v49, %v2506_v48  ;;  %v905_v28 = vcvt.s32.f32 %v903_v20  ;;  %v2968_v48 = vld [vmem:[#allocation12 + $0x174] sm:$0xf0]  ;;  %v2959_v49 = vld [vmem:[#allocation12 + $0x134] sm:$0xf] }
 0x383   : > { %897 = vmin.xlane.f32.xlu1 %v896_v29  ;;  %2167 = vadd.xlane.f32.xlu0 %v2166_v30  ;;  %v844_v29 = vcvt.f32.s32 %v3833_v62  ;;  %v858_v30 = vcvt.f32.s32 %v3837_v24  ;;  %v2965_v24 = vld [vmem:[#allocation12 + $0x164] sm:$0xf]  ;;  %v2647_v58 = vor.u32 %v2959_v49, %v2644_v51 }
 0x384   : > { %1239 = vmatpush.bf16.msra.mxu1 %v2507_v52  ;;  %v2671_v47 = vor.u32 %v2965_v24, %v2668_v40  ;;  %v2667_v52 = vor.u32 %v2968_v48, %v2666_v42  ;;  %v2500_v40 = vld [vmem:[#allocation12 + $0x28] sm:$0xf0] }
 0x385   : > { %v845_v43 = vshll.u32 %v844_v29, 16  ;;  %v859_v33 = vshll.u32 %v858_v30, 16  ;;  %v2929_v30 = vld [vmem:[#allocation12 + $0x44] sm:$0xf] }
 0x386   : > { %1378 = vmatpush.bf16.msra.mxu2 %v2671_v47  ;;  %v900_v47 = vcvt.f32.s32 %v3854_v27 }
 0x388   : > { %1240 = vmatpush.bf16.msra.mxu1 %v2483_v4  ;;  %v887_v4 = vshll.u32 %v886_v55, 16  ;;  %v901_v51 = vshll.u32 %v900_v47, 16  ;;  %v1481_v47 = vld [vmem:[#allocation14 + $0xd0] sm:$0xff] }
 0x38a   : > { %1379 = vmatpush.bf16.msra.mxu2 %v2647_v58 }
 0x38c   : > { %1349 = vmatpush.bf16.msrb.mxu1 %v2667_v52 }
 0x38e   : > { %1380 = vmatpush.bf16.msra.mxu2 %v2623_v9 }
 0x390   : > { %1350 = vmatpush.bf16.msrb.mxu1 %v2643_v59 }
 0x394   : > { %1351 = vmatpush.bf16.msrb.mxu1 %v2619_v10 }
 0x398   : > { %1352 = vmatpush.bf16.msrb.mxu1 %v2595_v17 }
 0x3c6   : > { %v814_v15 = vpop.xlane.xlu2 %813 }
 0x3c7   : > { %v815_v18 = vcvt.f32.s32 %v814_v15  ;;  %v2599_v15 = vor.u32 %v2947_v11, %v2596_v23 }
 0x3c9   : > { %v818_v39 = vadd.s32 %v817_v19, %v815_v18  ;;  %v2941_v18 = vld [vmem:[#allocation12 + $0xa4] sm:$0xf]  ;;  %v2572_v19 = vld [vmem:[#allocation12 + $0xb8] sm:$0xf0]  ;;  %1381 = vmatpush.bf16.msra.mxu2 %v2599_v15 }
 0x3ca   : > { %v2575_v20 = vor.u32 %v2941_v18, %v2572_v19 }
 0x3cb   : > { %vm917_vm14 = vcmp.eq.s32.totalorder %v3736_v1, %v818_v39  ;;  %v2935_v39 = vld [vmem:[#allocation12 + $0x74] sm:$0xf] }
 0x3cd   : > { %1382 = vmatpush.bf16.msra.mxu2 %v2575_v20 }
 0x3ce   : > { %v828_v21 = vpop.xlane.xlu0 %827 }
 0x3cf   : > { %v829_v25 = vcvt.f32.s32 %v828_v21  ;;  %v2570_v21 = vld [vmem:[#allocation12 + $0xa0] sm:$0xf] }
 0x3d1   : > { %v832_v26 = vadd.s32 %v831_v22, %v829_v25  ;;  %v2944_v22 = vld [vmem:[#allocation12 + $0xb4] sm:$0xf0] }
 0x3d2   : > { %v3861_v41 = vpop.xlane.xlu2 %907  ;;  %v2571_v25 = vor.u32 %v2944_v22, %v2570_v21  ;;  %v1497_v21 = vld [vmem:[#allocation14 + $0x150] sm:$0xff] }
 0x3d3   : > { %vm918_vm15 = vcmp.eq.s32.totalorder %v3736_v1, %v832_v26  ;;  %vm909_vm0 = vcmp.eq.f32.partialorder %v3830_v61, %v3861_v41  ;;  %v2548_v26 = vld [vmem:[#allocation12 + $0x88] sm:$0xf0]  ;;  %v914_v48 = vcvt.f32.s32 %v3861_v41 }
 0x3d4   : > { %vm3867_vm1 = vmpackc.low %vm918_vm15, %vm917_vm14  ;;  %v910_v54 = vsel %vm909_vm0, %v905_v28, inf  ;;  %v2551_v28 = vor.u32 %v2935_v39, %v2548_v26  ;;  %1353 = vmatpush.bf16.msrb.mxu1 %v2571_v25  ;;  %v1499_v25 = vld [vmem:[#allocation14 + $0x160] sm:$0xff] }
 0x3d5   : > { %911 = vmin.xlane.f32.xlu2 %v910_v54  ;;  %2673 = vmatmul.msk.bf16.vlgmr.msra.gmra.mxu1 %vm3867_vm1, %v3560_v57  ;;  %v2546_v54 = vld [vmem:[#allocation12 + $0x70] sm:$0xf]  ;;  %v915_v35 = vshll.u32 %v914_v48, 16 }
 0x3d6   : > { %2681 = vmatmul.msk.bf16.vlgmr.msrb.gmra.mxu2 %vm3867_vm1, %v3560_v57  ;;  %2689 = vmatmul.msk.bf16.vlgmr.msrb.gmra.mxu0 %vm3867_vm1, %v3560_v57  ;;  %v842_v61 = vpop.xlane.xlu0 %841 }
 0x3d7   : > { %2697 = vmatmul.msk.bf16.vlgmr.msra.gmra.mxu3 %vm3867_vm1, %v3560_v57  ;;  %v843_v31 = vcvt.f32.s32 %v842_v61  ;;  %1383 = vmatpush.bf16.msra.mxu2 %v2551_v28  ;;  %v2938_v61 = vld [vmem:[#allocation12 + $0x84] sm:$0xf0]  ;;  %v1491_v28 = vld [vmem:[#allocation14 + $0x120] sm:$0xff] }
 0x3d8   : > { %v2547_v29 = vor.u32 %v2938_v61, %v2546_v54 }
 0x3d9   : > { %v846_v34 = vadd.s32 %v845_v43, %v843_v31  ;;  %v2524_v31 = vld [vmem:[#allocation12 + $0x58] sm:$0xf0] }
 0x3da   : > { %v2527_v43 = vor.u32 %v2929_v30, %v2524_v31  ;;  %1354 = vmatpush.bf16.msrb.mxu1 %v2547_v29  ;;  %v1493_v31 = vld [vmem:[#allocation14 + $0x130] sm:$0xff] }
 0x3db   : > { %vm919_vm2 = vcmp.eq.s32.totalorder %v3736_v1, %v846_v34 }
 0x3dc   : > { %1384 = vmatpush.bf16.msra.mxu2 %v2527_v43 }
 0x3de   : > { %v856_v32 = vpop.xlane.xlu1 %855 }
 0x3df   : > { %v857_v46 = vcvt.f32.s32 %v856_v32  ;;  %v2522_v32 = vld [vmem:[#allocation12 + $0x40] sm:$0xf] }
 0x3e1   : > { %v860_v36 = vadd.s32 %v859_v33, %v857_v46  ;;  %v2932_v33 = vld [vmem:[#allocation12 + $0x54] sm:$0xf0]  ;;  %v2498_v46 = vld [vmem:[#allocation12 + $0x10] sm:$0xf] }
 0x3e2   : > { %v2523_v34 = vor.u32 %v2932_v33, %v2522_v32  ;;  %v1485_v33 = vld [vmem:[#allocation14 + $0xf0] sm:$0xff] }
 0x3e3   : > { %vm920_vm3 = vcmp.eq.s32.totalorder %v3736_v1, %v860_v36  ;;  %v2926_v36 = vld [vmem:[#allocation12 + $0x24] sm:$0xf0] }
 0x3e4   : > { %vm3887_vm4 = vmpackc.low %vm920_vm3, %vm919_vm2  ;;  %1355 = vmatpush.bf16.msrb.mxu1 %v2523_v34  ;;  %v2499_v24 = vor.u32 %v2926_v36, %v2498_v46  ;;  %v1487_v36 = vld [vmem:[#allocation14 + $0x100] sm:$0xff] }
 0x3e5   : > { %2675 = vmatmul.msk.bf16.gmra.mxu1 %vm3887_vm4, %v3560_v57 }
 0x3e6   : > { %2683 = vmatmul.msk.bf16.gmra.mxu2 %vm3887_vm4, %v3560_v57  ;;  %2691 = vmatmul.msk.bf16.gmra.mxu0 %vm3887_vm4, %v3560_v57  ;;  %v870_v62 = vpop.xlane.xlu2 %869 }
 0x3e7   : > { %2699 = vmatmul.msk.bf16.gmra.mxu3 %vm3887_vm4, %v3560_v57  ;;  %v871_v56 = vcvt.f32.s32 %v870_v62  ;;  %v2923_v62 = vld [vmem:[#allocation12 + $0x14] sm:$0xf] }
 0x3e8   : > { %v2503_v42 = vor.u32 %v2923_v62, %v2500_v40  ;;  %1356 = vmatpush.bf16.msrb.mxu1 %v2499_v24  ;;  %v1479_v40 = vld [vmem:[#allocation14 + $0xc0] sm:$0xff] }
 0x3e9   : > { %v874_v5 = vadd.s32 %v873_v2, %v871_v56 }
 0x3ea   : > { %1385 = vmatpush.bf16.msra.mxu2 %v2503_v42 }
 0x3eb   : > { %vm921_vm5 = vcmp.eq.s32.totalorder %v3736_v1, %v874_v5 }
 0x3ee   : > { %v884_v6 = vpop.xlane.xlu0 %883 }
 0x3ef   : > { %v885_v8 = vcvt.f32.s32 %v884_v6 }
 0x3f1   : > { %v888_v12 = vadd.s32 %v887_v4, %v885_v8 }
 0x3f3   : > { %vm922_vm6 = vcmp.eq.s32.totalorder %v3736_v1, %v888_v12 }
 0x3f4   : > { %vm3907_vm7 = vmpackc.low %vm922_vm6, %vm921_vm5 }
 0x3f5   : > { %2677 = vmatmul.msk.bf16.gmra.mxu1 %vm3907_vm7, %v3560_v57 }
 0x3f6   : > { %2685 = vmatmul.msk.bf16.gmra.mxu2 %vm3907_vm7, %v3560_v57  ;;  %2693 = vmatmul.msk.bf16.gmra.mxu0 %vm3907_vm7, %v3560_v57  ;;  %v898_v45 = vpop.xlane.xlu1 %897 }
 0x3f7   : > { %2701 = vmatmul.msk.bf16.gmra.mxu3 %vm3907_vm7, %v3560_v57  ;;  %v899_v49 = vcvt.f32.s32 %v898_v45 }
 0x3f9   : > { %v902_v53 = vadd.s32 %v901_v51, %v899_v49  ;;  %v1473_v51 = vld [vmem:[#allocation14 + $0x90] sm:$0xff] }
 0x3fb   : > { %vm923_vm9 = vcmp.eq.s32.totalorder %v3736_v1, %v902_v53 }
 0x448   : > { %v912_v52 = vpop.xlane.xlu2 %911 }
 0x449   : > { %v913_v55 = vcvt.f32.s32 %v912_v52 }
 0x44b   : > { %v916_v56 = vadd.s32 %v915_v35, %v913_v55  ;;  %v1475_v55 = vld [vmem:[#allocation14 + $0xa0] sm:$0xff] }
 0x44d   : > { %vm924_vm11 = vcmp.eq.s32.totalorder %v3736_v1, %v916_v56 }
 0x44e   : > { %vm2678_vm12 = vmpackc.low %vm924_vm11, %vm923_vm9  ;;  %vm2272_vm9 = vcmask 1041408   ;;  %vm2274_vm11 = vcmask 1043459  }
 0x44f   : > { %2679 = vmatmul.msk.bf16.gmra.mxu1 %vm2678_vm12, %v3560_v57  ;;  %2687 = vmatmul.msk.bf16.gmra.mxu2 %vm2678_vm12, %v3560_v57 }
 0x450   : > { %2695 = vmatmul.msk.bf16.gmra.mxu0 %vm2678_vm12, %v3560_v57  ;;  %2703 = vmatmul.msk.bf16.gmra.mxu3 %vm2678_vm12, %v3560_v57 }
 0x452   : > { %v1242_v1 = vpop.f32.mrf.mxu1 }
 0x453   : > { %v3951_v27 = vpop.f32.mrf.mxu0  ;;  %3129 = vtanh.f32 %v1242_v1 }
 0x459   : > { %v3953_v41 = vpop.f32.mrf.mxu2  ;;  %v3975_v19 = vpop.eup %3129 }
 0x45a   : > { %v1244_v50 = vpop.f32.mrf.mxu1  ;;  %v3957_v63 = vpop.f32.mrf.mxu3 }
 0x45b   : > { %v1302_v38 = vpop.f32.mrf.mxu0 }
 0x45f   : > { %2705 = vmatmul.msk.bf16.vlgmr.msrb.gmra.mxu1 %vm3867_vm1, %v3560_v57  ;;  %2713 = vmatmul.msk.bf16.vlgmr.msra.gmra.mxu2 %vm3867_vm1, %v3560_v57 }
 0x461   : > { %v3955_v58 = vpop.f32.mrf.mxu2 }
 0x462   : > { %v1247_v59 = vpop.f32.mrf.mxu1  ;;  %v3961_v6 = vpop.f32.mrf.mxu3 }
 0x463   : > { %v1305_v60 = vpop.f32.mrf.mxu0 }
 0x469   : > { %v3959_v2 = vpop.f32.mrf.mxu2 }
 0x46a   : > { %v1249_v3 = vpop.f32.mrf.mxu1  ;;  %v3965_v8 = vpop.f32.mrf.mxu3 }
 0x46b   : > { %v1307_v37 = vpop.f32.mrf.mxu0 }
 0x46f   : > { %2707 = vmatmul.msk.bf16.gmra.mxu1 %vm3887_vm4, %v3560_v57  ;;  %2715 = vmatmul.msk.bf16.gmra.mxu2 %vm3887_vm4, %v3560_v57 }
 0x472   : > { %v1252_v4 = vpop.f32.mrf.mxu1  ;;  %v3969_v23 = vpop.f32.mrf.mxu3 }
 0x473   : > { %v1310_v5 = vpop.f32.mrf.mxu0 }
 0x47a   : > { %v1254_v10 = vpop.f32.mrf.mxu1  ;;  %v3973_v15 = vpop.f32.mrf.mxu3 }
 0x47b   : > { %v1312_v11 = vpop.f32.mrf.mxu0 }
 0x47f   : > { %2709 = vmatmul.msk.bf16.gmra.mxu1 %vm3907_vm7, %v3560_v57  ;;  %2717 = vmatmul.msk.bf16.gmra.mxu2 %vm3907_vm7, %v3560_v57 }
 0x482   : > { %v3977_v61 = vpop.f32.mrf.mxu3 }
 0x48f   : > { %2711 = vmatmul.msk.bf16.gmra.mxu1 %vm2678_vm12, %v3560_v57  ;;  %2719 = vmatmul.msk.bf16.gmra.mxu2 %vm2678_vm12, %v3560_v57  ;;  %v3963_v57 = vpop.f32.mrf.mxu2  ;;  %vm2276_vm12 = vcmask 1044483  }
 0x497   : > { %v3967_v9 = vpop.f32.mrf.mxu2 }
 0x49f   : > { %v3971_v12 = vpop.f32.mrf.mxu2 }
 0x4cc   : > { %v1257_v13 = vpop.f32.mrf.mxu1 }
 0x4cd   : > { %v1315_v14 = vpop.f32.mrf.mxu0  ;;  %3131 = vtanh.f32 %v1257_v13  ;;  %v1463_v13 = vld [vmem:[#allocation14 + $0x40] sm:$0xff] }
 0x4ce   : > { %3133 = vtanh.f32 %v1315_v14 }
 0x4d2   : > { %v1286_v16 = vpop.f32.mrf.mxu2 }
 0x4d3   : > { %v3132_v20 = vpop.eup %3131 }
 0x4d4   : > { %v1259_v17 = vpop.f32.mrf.mxu1  ;;  %v3134_v22 = vpop.eup %3133  ;;  %v1539_v46 = vmul.f32 %v3132_v20, %v1491_v28  ;;  %v1492_v28 = vld [vmem:[#allocation14 + $0x128] sm:$0xff] }
 0x4d5   : > { %3135 = vtanh.f32 %v1259_v17  ;;  %v1317_v18 = vpop.f32.mrf.mxu0  ;;  %v1541_v24 = vmul.f32 %v3134_v22, %v1493_v31  ;;  %v1498_v22 = vld [vmem:[#allocation14 + $0x158] sm:$0xff]  ;;  %v3992_v31 = vld [vmem:[#allocation15] sm:$0xf] }
 0x4d6   : > { %3137 = vtanh.f32 %v1317_v18 }
 0x4d7   : > { %3139 = vtanh.f32 %v1254_v10 }
 0x4d8   : > { %3141 = vtanh.f32 %v1312_v11 }
 0x4d9   : > { %3143 = vtanh.f32 %v1252_v4 }
 0x4da   : > { %3145 = vtanh.f32 %v1310_v5  ;;  %v1288_v39 = vpop.f32.mrf.mxu2  ;;  %v1461_v5 = vld [vmem:[#allocation14 + $0x30] sm:$0xff] }
 0x4db   : > { %v3136_v26 = vpop.eup %3135  ;;  %3147 = vtanh.f32 %v1249_v3  ;;  %v1469_v3 = vld [vmem:[#allocation14 + $0x70] sm:$0xff] }
 0x4dc   : > { %v3138_v54 = vpop.eup %3137  ;;  %3149 = vtanh.f32 %v1307_v37  ;;  %v3979_v29 = vpop.f32.mrf.mxu1  ;;  %v1545_v30 = vmul.f32 %v3136_v26, %v1497_v21  ;;  %v1457_v21 = vld [vmem:[#allocation14 + $0x10] sm:$0xff] }
 0x4dd   : > { %v3140_v43 = vpop.eup %3139  ;;  %3151 = vtanh.f32 %v1247_v59  ;;  %v1547_v32 = vmul.f32 %v3138_v54, %v1499_v25  ;;  %v1344_v59 = vpop.f32.mrf.mxu3 }
 0x4de   : > { %v3142_v34 = vpop.eup %3141  ;;  %3153 = vtanh.f32 %v1305_v60  ;;  %1563 = vmatpush.msra.mxu0 %v1545_v30  ;;  %v1533_v45 = vmul.f32 %v3140_v43, %v1485_v33 }
 0x4df   : > { %v3144_v62 = vpop.eup %3143  ;;  %3155 = vtanh.f32 %v1244_v50  ;;  %1603 = vmatpush.msrb.mxu3 %v1547_v32  ;;  %v1535_v49 = vmul.f32 %v3142_v34, %v1487_v36  ;;  %v1467_v50 = vld [vmem:[#allocation14 + $0x60] sm:$0xff]  ;;  %v1486_v32 = vld [vmem:[#allocation14 + $0xf8] sm:$0xff]  ;;  %v1480_v34 = vld [vmem:[#allocation14 + $0xc8] sm:$0xff] }
 0x4e0   : > { %v3146_v42 = vpop.eup %3145  ;;  %3157 = vtanh.f32 %v1302_v38  ;;  %1564 = vmatpush.msra.mxu0 %v1539_v46  ;;  %v1527_v53 = vmul.f32 %v3144_v62, %v1479_v40  ;;  %v1474_v36 = vld [vmem:[#allocation14 + $0x98] sm:$0xff] }
 0x4e1   : > { %v3148_v48 = vpop.eup %3147  ;;  %3159 = vtanh.f32 %v3951_v27  ;;  %1604 = vmatpush.msrb.mxu3 %v1541_v24  ;;  %v1529_v1 = vmul.f32 %v3146_v42, %v1481_v47 }
 0x4e2   : > { %v3150_v52 = vpop.eup %3149  ;;  %3161 = vtanh.f32 %v1288_v39  ;;  %v3982_v35 = vpop.f32.mrf.mxu2  ;;  %1565 = vmatpush.msra.mxu0 %v1533_v45  ;;  %v1521_v27 = vmul.f32 %v3148_v48, %v1473_v51  ;;  %v1462_v48 = vld [vmem:[#allocation14 + $0x38] sm:$0xff]  ;;  %v1456_v51 = vld [vmem:[#allocation14 + $0x8] sm:$0xff] }
 0x4e3   : > { %v3152_v56 = vpop.eup %3151  ;;  %1605 = vmatpush.msrb.mxu3 %v1535_v49  ;;  %3163 = vtanh.f32 %v1286_v16  ;;  %v1523_v4 = vmul.f32 %v3150_v52, %v1475_v55  ;;  %v1455_v16 = vld [vmem:[#allocation14] sm:$0xff]  ;;  %v1500_v55 = vld [vmem:[#allocation14 + $0x168] sm:$0xff] }
 0x4e4   : > { %v3154_v38 = vpop.eup %3153  ;;  %v3984_v60 = vpop.f32.mrf.mxu1  ;;  %1566 = vmatpush.msra.mxu0 %v1527_v53  ;;  %3165 = vtanh.f32 %v3971_v12  ;;  %v1515_v11 = vmul.f32 %v3152_v56, %v1467_v50  ;;  %v1503_v26 = vmul.f32 %v3975_v19, %v1455_v16  ;;  %v1494_v50 = vld [vmem:[#allocation14 + $0x138] sm:$0xff] }
 0x4e5   : > { %v3156_v37 = vpop.eup %3155  ;;  %1606 = vmatpush.msrb.mxu3 %v1529_v1  ;;  %v1517_v17 = vmul.f32 %v3154_v38, %v1469_v3  ;;  %3167 = vtanh.f32 %v3967_v9  ;;  %v1346_v19 = vpop.f32.mrf.mxu3 }
 0x4e6   : > { %v3158_v10 = vpop.eup %3157  ;;  %1567 = vmatpush.msra.mxu0 %v1521_v27  ;;  %v1509_v20 = vmul.f32 %v3156_v37, %v1461_v5  ;;  %3169 = vtanh.f32 %v3963_v57  ;;  %v1488_v27 = vld [vmem:[#allocation14 + $0x108] sm:$0xff] }
 0x4e7   : > { %v3160_v14 = vpop.eup %3159  ;;  %1607 = vmatpush.msrb.mxu3 %v1523_v4  ;;  %v1511_v39 = vmul.f32 %v3158_v10, %v1463_v13  ;;  %3171 = vtanh.f32 %v3959_v2  ;;  %v1482_v4 = vld [vmem:[#allocation14 + $0xd8] sm:$0xff]  ;;  %v1476_v10 = vld [vmem:[#allocation14 + $0xa8] sm:$0xff] }
 0x4e8   : > { %v3162_v18 = vpop.eup %3161  ;;  %1568 = vmatpush.msra.mxu0 %v1515_v11  ;;  %v1505_v54 = vmul.f32 %v3160_v14, %v1457_v21  ;;  %3173 = vtanh.f32 %v3955_v58  ;;  %v1468_v58 = vld [vmem:[#allocation14 + $0x68] sm:$0xff]  ;;  %v1470_v13 = vld [vmem:[#allocation14 + $0x78] sm:$0xff] }
 0x4e9   : > { %1608 = vmatpush.msrb.mxu3 %v1517_v17  ;;  %v3164_v25 = vpop.eup %3163  ;;  %v1546_v30 = vmul.f32 %v3162_v18, %v1498_v22  ;;  %3175 = vtanh.f32 %v3953_v41  ;;  %v1464_v18 = vld [vmem:[#allocation14 + $0x48] sm:$0xff]  ;;  %v1458_v22 = vld [vmem:[#allocation14 + $0x18] sm:$0xff] }
 0x4ea   : > { %v3989_v12 = vpop.f32.mrf.mxu2  ;;  %1569 = vmatpush.msra.mxu0 %v1509_v20  ;;  %v3166_v9 = vpop.eup %3165  ;;  %v1540_v57 = vmul.f32 %v3164_v25, %v1492_v28  ;;  %3177 = vtanh.f32 %v1346_v19  ;;  %v2982_v19 = vld [vmem:[#allocation17 + $0x68] sm:$0xff] }
 0x4eb   : > { %1609 = vmatpush.msrb.mxu3 %v1511_v39  ;;  %v3168_v33 = vpop.eup %3167  ;;  %v1534_v2 = vmul.f32 %v3166_v9, %v1486_v32  ;;  %3179 = vtanh.f32 %v1344_v59  ;;  %v2983_v32 = vld [vmem:[#allocation17 + $0x70] sm:$0xff] }
 0x4ec   : > { %v3995_v43 = vpop.f32.mrf.mxu1  ;;  %1570 = vmatpush.msra.mxu0 %v1503_v26  ;;  %v3170_v46 = vpop.eup %3169  ;;  %v1528_v62 = vmul.f32 %v3168_v33, %v1480_v34  ;;  %3181 = vtanh.f32 %v3977_v61  ;;  %v1501_v33 = vld [vmem:[#allocation14 + $0x170] sm:$0xff] }
 0x4ed   : > { %1610 = vmatpush.msrb.mxu3 %v1505_v54  ;;  %2720 = vmatmul.msk.f32.vlgmr.msra.gmra.mxu0 %vm605_vm8, %v3992_v31  ;;  %v3172_v24 = vpop.eup %3171  ;;  %v1522_v42 = vmul.f32 %v3170_v46, %v1474_v36  ;;  %3183 = vtanh.f32 %v3973_v15  ;;  %v2984_v54 = vld [vmem:[#allocation17 + $0x78] sm:$0xff]  ;;  %v2974_v34 = vld [vmem:[#allocation17 + $0x28] sm:$0xff] }
 0x4ee   : > { %1583 = vmatpush.msrb.mxu0 %v1546_v30  ;;  %2722 = vmatmul.msk.f32.vlgmr.msrb.gmra.mxu3 %vm605_vm8, %v3992_v31  ;;  %v3174_v45 = vpop.eup %3173  ;;  %v1516_v49 = vmul.f32 %v3172_v24, %v1468_v58  ;;  %3185 = vtanh.f32 %v3969_v23  ;;  %v2976_v30 = vld [vmem:[#allocation17 + $0x38] sm:$0xff] }
 0x4ef   : > { %v3176_v41 = vpop.eup %3175  ;;  %v1510_v53 = vmul.f32 %v3174_v45, %v1462_v48  ;;  %3187 = vtanh.f32 %v3965_v8  ;;  %2082 = vmatpush.bf16.msrb.mxu2 %v2984_v54  ;;  %2069 = vmatpush.bf16.msra.mxu1 %v2976_v30  ;;  %v2973_v45 = vld [vmem:[#allocation17 + $0x20] sm:$0xff] }
 0x4f0   : > { %1584 = vmatpush.msrb.mxu0 %v1540_v57  ;;  %v3178_v52 = vpop.eup %3177  ;;  %v1504_v1 = vmul.f32 %v3176_v41, %v1456_v51  ;;  %3189 = vtanh.f32 %v3961_v6  ;;  %v2975_v57 = vld [vmem:[#allocation17 + $0x30] sm:$0xff]  ;;  %v1483_v51 = vld [vmem:[#allocation14 + $0xe0] sm:$0xff]  ;;  %v1460_v54 = vld [vmem:[#allocation14 + $0x28] sm:$0xff] }
 0x4f1   : > { %v3180_v56 = vpop.eup %3179  ;;  %v1548_v59 = vmul.f32 %v3178_v52, %v1500_v55  ;;  %3191 = vtanh.f32 %v3957_v63  ;;  %v1502_v52 = vld [vmem:[#allocation14 + $0x178] sm:$0xff]  ;;  %v1477_v55 = vld [vmem:[#allocation14 + $0xb0] sm:$0xff] }
 0x4f2   : > { %1585 = vmatpush.msrb.mxu0 %v1534_v2  ;;  %v4003_v40 = vpop.f32.mrf.mxu2  ;;  %v3182_v61 = vpop.eup %3181  ;;  %v1542_v15 = vmul.f32 %v3180_v56, %v1494_v50  ;;  %v2972_v50 = vld [vmem:[#allocation17 + $0x18] sm:$0xff] }
 0x4f3   : > { %v3184_v37 = vpop.eup %3183  ;;  %v1536_v23 = vmul.f32 %v3182_v61, %v1488_v27  ;;  %2083 = vmatpush.bf16.msrb.mxu2 %v2983_v32  ;;  %2070 = vmatpush.bf16.msra.mxu1 %v2975_v57  ;;  %v3000_v57 = vld [vmem:[#allocation17 + $0xf8] sm:$0xff] }
 0x4f4   : > { %1586 = vmatpush.msrb.mxu0 %v1528_v62  ;;  %v4005_v47 = vpop.f32.mrf.mxu1  ;;  %v3186_v5 = vpop.eup %3185  ;;  %v1530_v8 = vmul.f32 %v3184_v37, %v1482_v4  ;;  %v1495_v62 = vld [vmem:[#allocation14 + $0x140] sm:$0xff] }
 0x4f5   : > { %v3188_v11 = vpop.eup %3187  ;;  %v1524_v17 = vmul.f32 %v3186_v5, %v1476_v10  ;;  %v1484_v10 = vld [vmem:[#allocation14 + $0xe8] sm:$0xff] }
 0x4f6   : > { %1587 = vmatpush.msrb.mxu0 %v1522_v42  ;;  %v3190_v16 = vpop.eup %3189  ;;  %v1518_v20 = vmul.f32 %v3188_v11, %v1470_v13  ;;  %v1489_v42 = vld [vmem:[#allocation14 + $0x110] sm:$0xff] }
 0x4f7   : > { %v3192_v21 = vpop.eup %3191  ;;  %v1512_v39 = vmul.f32 %v3190_v16, %v1464_v18  ;;  %2084 = vmatpush.bf16.msrb.mxu2 %v2982_v19  ;;  %2071 = vmatpush.bf16.msra.mxu1 %v2974_v34  ;;  %v2979_v11 = vld [vmem:[#allocation17 + $0x50] sm:$0xff]  ;;  %v1459_v16 = vld [vmem:[#allocation14 + $0x20] sm:$0xff] }
 0x4f8   : > { %1588 = vmatpush.msrb.mxu0 %v1516_v49  ;;  %v1506_v25 = vmul.f32 %v3192_v21, %v1458_v22  ;;  %v1478_v18 = vld [vmem:[#allocation14 + $0xb8] sm:$0xff]  ;;  %v1472_v21 = vld [vmem:[#allocation14 + $0x88] sm:$0xff] }
 0x4f9   : > { %v2999_v19 = vld [vmem:[#allocation17 + $0xf0] sm:$0xff]  ;;  %v2989_v34 = vld [vmem:[#allocation17 + $0xa0] sm:$0xff] }
 0x4fa   : > { %1589 = vmatpush.msrb.mxu0 %v1510_v53  ;;  %v4010_v38 = vpop.f32.mrf.mxu2 }
 0x4fb   : > { %2072 = vmatpush.bf16.msra.mxu1 %v2973_v45  ;;  %v2977_v45 = vld [vmem:[#allocation17 + $0x40] sm:$0xff] }
 0x4fc   : > { %1590 = vmatpush.msrb.mxu0 %v1504_v1  ;;  %v1368_v3 = vpop.f32.mrf.mxu1  ;;  %v1496_v1 = vld [vmem:[#allocation14 + $0x148] sm:$0xff] }
 0x4fd   : > { %2721 = vmatmul.msk.f32.vlgmr.msrb.gmra.mxu0 %vm605_vm8, %v3992_v31 }
 0x4fe   : > { %1623 = vmatpush.msra.mxu0 %v1548_v59 }
 0x4ff   : > { %2073 = vmatpush.bf16.msra.mxu1 %v2972_v50  ;;  %v3005_v50 = vld [vmem:[#allocation17 + $0x120] sm:$0xff] }
 0x500   : > { %1624 = vmatpush.msra.mxu0 %v1542_v15  ;;  %v1471_v15 = vld [vmem:[#allocation14 + $0x80] sm:$0xff] }
 0x502   : > { %1625 = vmatpush.msra.mxu0 %v1536_v23  ;;  %v1397_v14 = vpop.f32.mrf.mxu2 }
 0x504   : > { %1626 = vmatpush.msra.mxu0 %v1530_v8  ;;  %v1370_v6 = vpop.f32.mrf.mxu1  ;;  %v2971_v8 = vld [vmem:[#allocation17 + $0x10] sm:$0xff] }
 0x505   : > { %2074 = vmatpush.bf16.msra.mxu1 %v2971_v8 }
 0x506   : > { %1627 = vmatpush.msra.mxu0 %v1524_v17 }
 0x508   : > { %1628 = vmatpush.msra.mxu0 %v1518_v20 }
 0x50a   : > { %1629 = vmatpush.msra.mxu0 %v1512_v39  ;;  %v1399_v63 = vpop.f32.mrf.mxu2 }
 0x50c   : > { %1630 = vmatpush.msra.mxu0 %v1506_v25  ;;  %v1373_v26 = vpop.f32.mrf.mxu1  ;;  %v2992_v25 = vld [vmem:[#allocation17 + $0xb8] sm:$0xff] }
 0x50d   : > { %2723 = vmatmul.msk.f32.vlgmr.msra.gmra.mxu0 %vm605_vm8, %v3992_v31  ;;  %3193 = vtanh.f32 %v1373_v26  ;;  %v1466_v26 = vld [vmem:[#allocation14 + $0x58] sm:$0xff] }
 0x512   : > { %v1402_v28 = vpop.f32.mrf.mxu2 }
 0x513   : > { %v3194_v2 = vpop.eup %3193 }
 0x514   : > { %v1375_v9 = vpop.f32.mrf.mxu1  ;;  %v1543_v49 = vmul.f32 %v3194_v2, %v1495_v62  ;;  %v2998_v2 = vld [vmem:[#allocation17 + $0xe8] sm:$0xff] }
 0x515   : > { %3195 = vtanh.f32 %v1375_v9  ;;  %v2991_v9 = vld [vmem:[#allocation17 + $0xb0] sm:$0xff]  ;;  %v2978_v62 = vld [vmem:[#allocation17 + $0x48] sm:$0xff] }
 0x516   : > { %3197 = vtanh.f32 %v1370_v6 }
 0x517   : > { %3199 = vtanh.f32 %v4005_v47  ;;  %v2981_v47 = vld [vmem:[#allocation17 + $0x60] sm:$0xff] }
 0x518   : > { %3201 = vtanh.f32 %v1368_v3  ;;  %2085 = vmatpush.bf16.msrb.mxu2 %v2981_v47  ;;  %v2996_v47 = vld [vmem:[#allocation17 + $0xd8] sm:$0xff] }
 0x519   : > { %3203 = vtanh.f32 %v1402_v28 }
 0x51a   : > { %v1404_v46 = vpop.f32.mrf.mxu2 }
 0x51b   : > { %v3196_v36 = vpop.eup %3195  ;;  %3205 = vtanh.f32 %v1404_v46  ;;  %v2988_v46 = vld [vmem:[#allocation17 + $0x98] sm:$0xff] }
 0x51c   : > { %3207 = vtanh.f32 %v3995_v43  ;;  %v1549_v24 = vmul.f32 %v3196_v36, %v1501_v33  ;;  %v3198_v58 = vpop.eup %3197  ;;  %v2990_v33 = vld [vmem:[#allocation17 + $0xa8] sm:$0xff] }
 0x51d   : > { %3209 = vtanh.f32 %v1399_v63  ;;  %v3200_v48 = vpop.eup %3199  ;;  %v1537_v43 = vmul.f32 %v3198_v58, %v1489_v42  ;;  %v2970_v36 = vld [vmem:[#allocation17 + $0x8] sm:$0xff]  ;;  %v2997_v58 = vld [vmem:[#allocation17 + $0xe0] sm:$0xff] }
 0x51e   : > { %3211 = vtanh.f32 %v3984_v60  ;;  %1643 = vmatpush.msra.mxu3 %v1549_v24  ;;  %v3202_v41 = vpop.eup %3201  ;;  %v2980_v60 = vld [vmem:[#allocation17 + $0x58] sm:$0xff]  ;;  %v1525_v4 = vmul.f32 %v3200_v48, %v1477_v55  ;;  %v2987_v24 = vld [vmem:[#allocation17 + $0x90] sm:$0xff]  ;;  %2075 = vmatpush.bf16.msra.mxu1 %v2970_v36  ;;  %v2969_v42 = vld [vmem:[#allocation17] sm:$0xff]  ;;  %v2168_v36 = vpop.xlane.xlu0 %2167 }
 0x51f   : > { %3213 = vtanh.f32 %v1397_v14  ;;  %v3204_v53 = vpop.eup %3203  ;;  %v1531_v61 = vmul.f32 %v3202_v41, %v1483_v51  ;;  %2086 = vmatpush.bf16.msrb.mxu2 %v2980_v60  ;;  %v3008_v48 = vld [vmem:[#allocation17 + $0x138] sm:$0xff]  ;;  %v2985_v41 = vld [vmem:[#allocation17 + $0x80] sm:$0xff]  ;;  %v2995_v51 = vld [vmem:[#allocation17 + $0xd0] sm:$0xff] }
 0x520   : > { %3215 = vtanh.f32 %v3979_v29  ;;  %1644 = vmatpush.msra.mxu3 %v1543_v49  ;;  %v1490_v29 = vld [vmem:[#allocation14 + $0x118] sm:$0xff]  ;;  %v1544_v23 = vmul.f32 %v3204_v53, %v1496_v1  ;;  %v3006_v55 = vld [vmem:[#allocation17 + $0x128] sm:$0xff]  ;;  %v2993_v1 = vld [vmem:[#allocation17 + $0xc0] sm:$0xff] }
 0x521   : > { %v3206_v56 = vpop.eup %3205  ;;  %3217 = vtanh.f32 %v4010_v38  ;;  %v1465_v38 = vld [vmem:[#allocation14 + $0x50] sm:$0xff]  ;;  %v3016_v49 = vld [vmem:[#allocation17 + $0x178] sm:$0xff]  ;;  %v3013_v60 = vld [vmem:[#allocation17 + $0x160] sm:$0xff] }
 0x522   : > { %v3208_v59 = vpop.eup %3207  ;;  %1645 = vmatpush.msra.mxu3 %v1537_v43  ;;  %v1550_v27 = vmul.f32 %v3206_v56, %v1502_v52  ;;  %3219 = vtanh.f32 %v4003_v40  ;;  %2076 = vmatpush.bf16.msra.mxu1 %v2969_v42  ;;  %v3007_v52 = vld [vmem:[#allocation17 + $0x130] sm:$0xff]  ;;  %v2994_v43 = vld [vmem:[#allocation17 + $0xc8] sm:$0xff] }
 0x523   : > { %v3210_v3 = vpop.eup %3209  ;;  %3221 = vtanh.f32 %v3989_v12  ;;  %v1519_v40 = vmul.f32 %v3208_v59, %v1471_v15  ;;  %2087 = vmatpush.bf16.msrb.mxu2 %v2979_v11  ;;  %v3015_v53 = vld [vmem:[#allocation17 + $0x170] sm:$0xff]  ;;  %v3014_v56 = vld [vmem:[#allocation17 + $0x168] sm:$0xff] }
 0x524   : > { %v3212_v37 = vpop.eup %3211  ;;  %1646 = vmatpush.msra.mxu3 %v1531_v61  ;;  %1663 = vmatpush.msrb.mxu0 %v1550_v27  ;;  %v1538_v14 = vmul.f32 %v3210_v3, %v1490_v29  ;;  %3223 = vtanh.f32 %v3982_v35  ;;  %v3004_v61 = vld [vmem:[#allocation17 + $0x118] sm:$0xff]  ;;  %v3003_v15 = vld [vmem:[#allocation17 + $0x110] sm:$0xff] }
 0x525   : > { %v3214_v5 = vpop.eup %3213  ;;  %v1513_v6 = vmul.f32 %v3212_v37, %v1465_v38  ;;  %v3012_v3 = vld [vmem:[#allocation17 + $0x158] sm:$0xff]  ;;  %v3011_v29 = vld [vmem:[#allocation17 + $0x150] sm:$0xff]  ;;  %v3010_v38 = vld [vmem:[#allocation17 + $0x148] sm:$0xff] }
 0x526   : > { %v3216_v13 = vpop.eup %3215  ;;  %1647 = vmatpush.msra.mxu3 %v1525_v4  ;;  %1664 = vmatpush.msrb.mxu0 %v1544_v23  ;;  %v1532_v20 = vmul.f32 %v3214_v5, %v1484_v10  ;;  %v3002_v23 = vld [vmem:[#allocation17 + $0x108] sm:$0xff] }
 0x527   : > { %v3218_v17 = vpop.eup %3217  ;;  %v1507_v22 = vmul.f32 %v3216_v13, %v1459_v16  ;;  %2088 = vmatpush.bf16.msrb.mxu2 %v2978_v62  ;;  %2121 = vmatpush.bf16.msrb.mxu1 %v3008_v48  ;;  %v3001_v13 = vld [vmem:[#allocation17 + $0x100] sm:$0xff]  ;;  %v2169_v62 = vadd.f32 1e-12, %v2168_v36 }
 0x528   : > { %1648 = vmatpush.msra.mxu3 %v1519_v40  ;;  %1665 = vmatpush.msrb.mxu0 %v1538_v14  ;;  %v3220_v12 = vpop.eup %3219  ;;  %v1526_v39 = vmul.f32 %v3218_v17, %v1478_v18  ;;  %v3009_v40 = vld [vmem:[#allocation17 + $0x140] sm:$0xff] }
 0x529   : > { %v3222_v63 = vpop.eup %3221  ;;  %v1520_v35 = vmul.f32 %v3220_v12, %v1472_v21  ;;  %3225 = vrsqrt.f32 %v2169_v62  ;;  %vm2176_vm14 = vweird.f32 %v2169_v62 }
 0x52a   : > { %1649 = vmatpush.msra.mxu3 %v1513_v6  ;;  %1666 = vmatpush.msrb.mxu0 %v1532_v20  ;;  %v3224_v28 = vpop.eup %3223  ;;  %v1514_v30 = vmul.f32 %v3222_v63, %v1466_v26  ;;  %v3128_v26 = vld [vmem:[%s4096_s11] ss:$0 sm:$0xff] }
 0x52b   : > { %v1508_v32 = vmul.f32 %v3224_v28, %v1460_v54  ;;  %2089 = vmatpush.bf16.msrb.mxu2 %v2977_v45  ;;  %2122 = vmatpush.bf16.msrb.mxu1 %v3007_v52 }
 0x52c   : > { %1650 = vmatpush.msra.mxu3 %v1507_v22  ;;  %1667 = vmatpush.msrb.mxu0 %v1526_v39 }
 0x52d   : > { %2724 = vmatmul.msk.f32.vlgmr.msra.gmra.mxu3 %vm605_vm8, %v3992_v31 }
 0x52e   : > { %1668 = vmatpush.msrb.mxu0 %v1520_v35  ;;  %2095 = vmatpush.bf16.msrb.mxu3 %v2992_v25 }
 0x52f   : > { %2134 = vmatpush.bf16.msra.mxu2 %v3016_v49  ;;  %2123 = vmatpush.bf16.msrb.mxu1 %v3006_v55 }
 0x530   : > { %1669 = vmatpush.msrb.mxu0 %v1514_v30 }
 0x532   : > { %1670 = vmatpush.msrb.mxu0 %v1508_v32  ;;  %2096 = vmatpush.bf16.msrb.mxu3 %v2991_v9 }
 0x533   : > { %2725 = vmatmul.msk.f32.vlgmr.msrb.gmra.mxu0 %vm605_vm8, %v3992_v31  ;;  %v2986_v31 = vld [vmem:[#allocation17 + $0x88] sm:$0xff]  ;;  %2135 = vmatpush.bf16.msra.mxu2 %v3015_v53  ;;  %vm2148_vm8 = vcmask 257024  }
 0x534   : > { %2108 = vmatpush.bf16.msra.mxu0 %v3000_v57  ;;  %2124 = vmatpush.bf16.msrb.mxu1 %v3005_v50 }
 0x536   : > { %2097 = vmatpush.bf16.msrb.mxu3 %v2990_v33 }
 0x537   : > { %2136 = vmatpush.bf16.msra.mxu2 %v3014_v56 }
 0x538   : > { %2109 = vmatpush.bf16.msra.mxu0 %v2999_v19  ;;  %2125 = vmatpush.bf16.msrb.mxu1 %v3004_v61 }
 0x53a   : > { %2098 = vmatpush.bf16.msrb.mxu3 %v2989_v34 }
 0x53b   : > { %2137 = vmatpush.bf16.msra.mxu2 %v3013_v60 }
 0x53c   : > { %2110 = vmatpush.bf16.msra.mxu0 %v2998_v2  ;;  %2126 = vmatpush.bf16.msrb.mxu1 %v3003_v15 }
 0x53e   : > { %2099 = vmatpush.bf16.msrb.mxu3 %v2988_v46 }
 0x53f   : > { %2138 = vmatpush.bf16.msra.mxu2 %v3012_v3 }
 0x540   : > { %2111 = vmatpush.bf16.msra.mxu0 %v2997_v58  ;;  %2127 = vmatpush.bf16.msrb.mxu1 %v3002_v23 }
 0x542   : > { %2100 = vmatpush.bf16.msrb.mxu3 %v2987_v24  ;;  %v3226_v24 = vpop.eup %3225 }
 0x543   : > { %2139 = vmatpush.bf16.msra.mxu2 %v3011_v29  ;;  %v2171_v58 = vmul.f32 %v3226_v24, %v2169_v62  ;;  %vm2177_vm13 = vweird.f32 %v3226_v24 }
 0x544   : > { %2112 = vmatpush.bf16.msra.mxu0 %v2996_v47  ;;  %2128 = vmatpush.bf16.msrb.mxu1 %v3001_v13  ;;  %vm2178_vm15 = vmor %vm2176_vm14, %vm2177_vm13  ;;  %vm2283_vm13 = vcmp.lt.s32.totalorder %v538_v0, 768 }
 0x545   : > { %v2172_v42 = vmul.f32 %v3226_v24, %v2171_v58 }
 0x546   : > { %2101 = vmatpush.bf16.msrb.mxu3 %v2986_v31 }
 0x547   : > { %2140 = vmatpush.bf16.msra.mxu2 %v3010_v38  ;;  %v2173_v47 = vmul.f32 0.5, %v2172_v42 }
 0x548   : > { %2113 = vmatpush.bf16.msra.mxu0 %v2995_v51 }
 0x549   : > { %v2174_v48 = vsub.f32 1.5, %v2173_v47 }
 0x54a   : > { %2102 = vmatpush.bf16.msrb.mxu3 %v2985_v41 }
 0x54b   : > { %2141 = vmatpush.bf16.msra.mxu2 %v3009_v40  ;;  %v2175_v41 = vmul.f32 %v3226_v24, %v2174_v48 }
 0x54c   : > { %2114 = vmatpush.bf16.msra.mxu0 %v2994_v43 }
 0x54d   : > { %v2179_v43 = vsel %vm2178_vm15, %v3226_v24, %v2175_v41 }
 0x54e   : > { %v2180_v56 = vmul.f32 %v2179_v43, %v3776_v44  ;;  %v2188_v44 = vshrl.u32 %v538_v0, 7 }
 0x550   : > { %2115 = vmatpush.bf16.msra.mxu0 %v2993_v1  ;;  %v2181_v61 = vperm.slane %v2180_v56, 0 }
 0x56a   : > { %v4031_v59 = vpop.f32.mrf.mxu0 }
 0x56b   : > { %v1675_v27 = vpack.c.bf16 %v4031_v59, %v4031_v59 }
 0x56d   : > { %2077 = vmatmul.bf16.vlgmr.msra.gmra.mxu1 %v1675_v27 }
 0x571   : > { %v4035_v37 = vpop.f32.mrf.mxu3 }
 0x572   : > { %v1677_v4 = vpack.c.bf16 %v4035_v37, %v4035_v37 }
 0x574   : > { %2103 = vmatmul.bf16.vlgmr.msrb.gmra.mxu3 %v1677_v4 }
 0x57a   : > { %v4039_v5 = vpop.f32.mrf.mxu0 }
 0x57b   : > { %v1676_v10 = vpack.c.bf16 %v4039_v5, %v4039_v5 }
 0x57d   : > { %2090 = vmatmul.bf16.vlgmr.msrb.gmra.mxu2 %v1676_v10 }
 0x58a   : > { %v4043_v8 = vpop.f32.mrf.mxu0 }
 0x58b   : > { %v1678_v11 = vpack.c.bf16 %v4043_v8, %v4043_v8 }
 0x58d   : > { %2116 = vmatmul.bf16.vlgmr.msra.gmra.mxu0 %v1678_v11 }
 0x5b0   : > { %v4047_v14 = vpop.f32.mrf.mxu3  ;;  %v4049_v17 = vpop.f32.mrf.mxu0 }
 0x5b1   : > { %v1679_v16 = vpack.c.bf16 %v4047_v14, %v4047_v14  ;;  %v1680_v18 = vpack.c.bf16 %v4049_v17, %v4049_v17 }
 0x5b3   : > { %2129 = vmatmul.bf16.vlgmr.msrb.gmra.mxu1 %v1679_v16  ;;  %2142 = vmatmul.bf16.vlgmr.msra.gmra.mxu2 %v1680_v18 }
 0x5ea   : > { %v2078_v6 = vpop.f32.mrf.mxu1 }
 0x5eb   : > { %v2079_v35 = vadd.f32 %v3128_v26, %v2078_v6 }
 0x5f2   : > { %v2080_v20 = vpop.f32.mrf.mxu1 }
 0x5f7   : > { %v2104_v12 = vpop.f32.mrf.mxu3 }
 0x5ff   : > { %v2106_v21 = vpop.f32.mrf.mxu3 }
 0x600   : > { %v2091_v22 = vpop.f32.mrf.mxu2 }
 0x601   : > { %v2092_v28 = vadd.f32 %v2091_v22, %v2079_v35 }
 0x603   : > { %v2105_v54 = vadd.f32 %v2104_v12, %v2092_v28 }
 0x608   : > { %v2093_v25 = vpop.f32.mrf.mxu2 }
 0x60a   : > { %v2117_v39 = vpop.f32.mrf.mxu0 }
 0x60b   : > { %v2118_v9 = vadd.f32 %v2117_v39, %v2105_v54 }
 0x612   : > { %v2119_v63 = vpop.f32.mrf.mxu0 }
 0x630   : > { %v2130_v30 = vpop.f32.mrf.mxu1 }
 0x631   : > { %v2131_v32 = vadd.f32 %v2130_v30, %v2118_v9 }
 0x636   : > { %v2143_v57 = vpop.f32.mrf.mxu2 }
 0x637   : > { %v2144_v33 = vadd.f32 %v2143_v57, %v2131_v32 }
 0x638   : > { %v2132_v19 = vpop.f32.mrf.mxu1 }
 0x639   : > { %v2147_v34 = vmul.f32 %v2144_v33, %v2144_v33 }
 0x63b   : > { %v2149_v2 = vsel %vm2148_vm8, %v2147_v34, 0.0 }
 0x63c   : > { %2150 = vadd.xlane.f32.xlu1 %v2149_v2 }
 0x63e   : > { %v2145_v46 = vpop.f32.mrf.mxu2 }
 0x6af   : > { %v2151_v45 = vpop.xlane.xlu1 %2150 }
 0x6b0   : > { %v2152_v31 = vadd.f32 1e-12, %v2151_v45 }
 0x6b2   : > { %3227 = vrsqrt.f32 %v2152_v31  ;;  %vm2159_vm1 = vweird.f32 %v2152_v31 }
 0x6b8   : > { %v3228_v49 = vpop.eup %3227 }
 0x6b9   : > { %v2154_v51 = vmul.f32 %v3228_v49, %v2152_v31  ;;  %vm2160_vm0 = vweird.f32 %v3228_v49 }
 0x6ba   : > { %vm2161_vm2 = vmor %vm2159_vm1, %vm2160_vm0 }
 0x6bb   : > { %v2155_v52 = vmul.f32 %v3228_v49, %v2154_v51 }
 0x6bd   : > { %v2156_v53 = vmul.f32 0.5, %v2155_v52 }
 0x6bf   : > { %v2157_v55 = vsub.f32 1.5, %v2156_v53 }
 0x6c1   : > { %v2158_v1 = vmul.f32 %v3228_v49, %v2157_v55 }
 0x6c3   : > { %v2162_v50 = vsel %vm2161_vm2, %v3228_v49, %v2158_v1 }
 0x6c4   : > { %v2163_v60 = vmul.f32 %v2162_v50, %v2144_v33 }
 0x6c6   : > { %v2182_v27 = vmul.f32 %v2181_v61, %v2163_v60 }
 0x6c8   : > { %v2183_v3 = vsel %vm2148_vm8, %v2182_v27, 0.0  ;;  %vm2278_vm8 = vcmask 1042432  }
 0x6c9   : > { %2184 = vadd.xlane.f32.xlu2 %v2183_v3 }
 0x73c   : > { %v2185_v15 = vpop.xlane.xlu2 %2184 }
 0x73d   : > { %v2186_v29 = vmul.f32 100.0, %v2185_v15 }
 0x73f   : > { %v2189_v4 = vsel %vm728_vm10, %v2186_v29, -inf }
 0x740   : > { %v2190_v23 = vrot.slane %v2189_v4, 4 }
 0x742   : > { %v2191_v38 = vmax.f32 %v2189_v4, %v2190_v23 }
 0x744   : > { %v2192_v10 = vrot.slane %v2191_v38, 2 }
 0x746   : > { %v2193_v11 = vmax.f32 %v2191_v38, %v2192_v10 }
 0x748   : > { %v2194_v13 = vrot.slane %v2193_v11, 1 }
 0x74a   : > { %v2195_v40 = vmax.f32 %v2193_v11, %v2194_v13 }
 0x74c   : > { %vm2196_vm3 = vcmp.ge.f32.partialorder %v2186_v29, %v2195_v40 }
 0x74d   : > { %v2197_v16 = vsel %vm2196_vm3, %v2188_v44, 4 }
 0x74e   : > { %v2198_v18 = vsel %vm728_vm10, %v2197_v16, 2147483647 }
 0x74f   : > { %v2199_v6 = vrot.slane %v2198_v18, 4 }
 0x751   : > { %vm2200_vm4 = vcmp.lt.s32.totalorder %v2198_v18, %v2199_v6 }
 0x752   : > { %v2201_v20 = vsel %vm2200_vm4, %v2198_v18, %v2199_v6 }
 0x753   : > { %v2202_v12 = vrot.slane %v2201_v20, 2 }
 0x755   : > { %vm2203_vm5 = vcmp.lt.s32.totalorder %v2201_v20, %v2202_v12 }
 0x756   : > { %v2204_v21 = vsel %vm2203_vm5, %v2201_v20, %v2202_v12 }
 0x757   : > { %v2205_v22 = vrot.slane %v2204_v21, 1 }
 0x759   : > { %vm2206_vm6 = vcmp.lt.s32.totalorder %v2204_v21, %v2205_v22 }
 0x75a   : > { %v2207_v39 = vsel %vm2206_vm6, %v2204_v21, %v2205_v22 }
 0x75b   : > { %vm2208_vm7 = vcmp.eq.s32.totalorder %v2188_v44, %v2207_v39 }
 0x75c   : > { %v2918_v25 = vsel %vm2208_vm7, 1.0, %v3559_v7 }
 0x75d   : > { %v2211_v63 = vmul.f32 %v2918_v25, %v4031_v59  ;;  %v2212_v26 = vmul.f32 %v2918_v25, %v4039_v5  ;;  %v2213_v35 = vmul.f32 %v2918_v25, %v4035_v37  ;;  %v2214_v28 = vmul.f32 %v2918_v25, %v4043_v8 }
 0x75e   : > { %v2215_v54 = vmul.f32 %v2918_v25, %v4047_v14  ;;  %v2216_v30 = vmul.f32 %v2918_v25, %v4049_v17 }
 0x75f   : > { %v2217_v9 = vsel %vm728_vm10, %v2211_v63, 0.0  ;;  %v2224_v32 = vsel %vm728_vm10, %v2212_v26, 0.0  ;;  %v2231_v57 = vsel %vm728_vm10, %v2213_v35, 0.0  ;;  %v2238_v7 = vsel %vm728_vm10, %v2214_v28, 0.0 }
 0x760   : > { %v2218_v33 = vrot.slane %v2217_v9, 4  ;;  %v2225_v59 = vrot.slane %v2224_v32, 4  ;;  %v2232_v19 = vrot.slane %v2231_v57, 4  ;;  %v2239_v5 = vrot.slane %v2238_v7, 4 }
 0x761   : > { %v2245_v37 = vsel %vm728_vm10, %v2215_v54, 0.0  ;;  %v2252_v8 = vsel %vm728_vm10, %v2216_v30, 0.0  ;;  %vm2270_vm10 = vcmask 1040384  }
 0x762   : > { %v2219_v34 = vadd.f32 %v2218_v33, %v2217_v9  ;;  %v2226_v14 = vadd.f32 %v2225_v59, %v2224_v32  ;;  %v2233_v2 = vadd.f32 %v2232_v19, %v2231_v57  ;;  %v2240_v17 = vadd.f32 %v2239_v5, %v2238_v7 }
 0x763   : > { %v2246_v46 = vrot.slane %v2245_v37, 4  ;;  %v2253_v36 = vrot.slane %v2252_v8, 4 }
 0x764   : > { %v2220_v62 = vrot.slane %v2219_v34, 2  ;;  %v2227_v24 = vrot.slane %v2226_v14, 2  ;;  %v2234_v58 = vrot.slane %v2233_v2, 2  ;;  %v2241_v42 = vrot.slane %v2240_v17, 2 }
 0x765   : > { %v2247_v45 = vadd.f32 %v2246_v46, %v2245_v37  ;;  %v2254_v31 = vadd.f32 %v2253_v36, %v2252_v8 }
 0x766   : > { %v2221_v47 = vadd.f32 %v2220_v62, %v2219_v34  ;;  %v2228_v48 = vadd.f32 %v2227_v24, %v2226_v14  ;;  %v2235_v49 = vadd.f32 %v2234_v58, %v2233_v2  ;;  %v2242_v41 = vadd.f32 %v2241_v42, %v2240_v17 }
 0x767   : > { %v2248_v51 = vrot.slane %v2247_v45, 2  ;;  %v2255_v52 = vrot.slane %v2254_v31, 2 }
 0x768   : > { %v2222_v53 = vrot.slane %v2221_v47, 1  ;;  %v2229_v43 = vrot.slane %v2228_v48, 1  ;;  %v2236_v55 = vrot.slane %v2235_v49, 1  ;;  %v2243_v56 = vrot.slane %v2242_v41, 1 }
 0x769   : > { %v2249_v1 = vadd.f32 %v2248_v51, %v2247_v45  ;;  %v2256_v50 = vadd.f32 %v2255_v52, %v2254_v31 }
 0x76a   : > { %v2230_v60 = vadd.f32 %v2229_v43, %v2228_v48  ;;  %v2237_v61 = vadd.f32 %v2236_v55, %v2235_v49  ;;  %v2244_v27 = vadd.f32 %v2243_v56, %v2242_v41  ;;  %v2223_v29 = vadd.f32 %v2222_v53, %v2221_v47 }
 0x76b   : > { %v2250_v3 = vrot.slane %v2249_v1, 1  ;;  %v2257_v15 = vrot.slane %v2256_v50, 1 }
 0x76c   : > { %v2265_v4 = vrot.slane %v2230_v60, 7  ;;  %v2266_v23 = vrot.slane %v2237_v61, 6  ;;  %v2267_v11 = vrot.slane %v2244_v27, 5 }
 0x76d   : > { %v2251_v38 = vadd.f32 %v2250_v3, %v2249_v1  ;;  %v2258_v10 = vadd.f32 %v2257_v15, %v2256_v50 }
 0x76e   : > { %v2271_v13 = vsel %vm2270_vm10, %v2223_v29, %v2265_v4 }
 0x76f   : > { %v2268_v44 = vrot.slane %v2251_v38, 4  ;;  %v2269_v40 = vrot.slane %v2258_v10, 3  ;;  %v2273_v16 = vsel %vm2272_vm9, %v2271_v13, %v2266_v23 }
 0x771   : > { %v2275_v18 = vsel %vm2274_vm11, %v2267_v11, %v2268_v44 }
 0x772   : > { %v2277_v6 = vsel %vm2276_vm12, %v2275_v18, %v2269_v40 }
 0x773   : > { %v2279_v20 = vsel %vm2278_vm8, %v2273_v16, %v2277_v6 }
 0x774   : > { %2285 = vst.msk [vmem:[%s537_s23] sm:$0x3f] %vm2283_vm13, %v2279_v20 }
 0x775 PF: > { %s35_s25 = sadd.s32 1, %s3539_s25  }
 0x776   : > { %p32_p7 = scmp.ge.s32.totalorder %s35_s25, 4  }
 0x778   :  { %34 = sbr.rel (!%p32_p7) target bundleno = 11 (0xb), region = 131 }
 0x77d   :  { %2305 = vsyncpa [#allocation5], 1 }
 0x77e   :  { %2307 = vsyncpa [#allocation5 + $0x1], 1 }
 0x77f   :  { %2308 = vsyncpa [#allocation7], 1 }
 0x780   :  { %2309 = vsyncpa [#allocation10], 1 }
 0x781   :  { %2310 = vsyncpa [#allocation13], 1 }
 0x782   :  { %2311 = vsyncpa [#allocation16], 1 }

</bundles_post_ra>
